<compile_context>
chip_gen: v5e
topology: v5e:2x2
jax: 0.10.0
libtpu: 0.0.40
codegen_flags: <defaults>
</compile_context>

<pallas_src>
import functools

import jax
import jax.numpy as jnp
from jax import lax
from jax.experimental import pallas as pl
from jax.experimental.pallas import tpu as pltpu


def _pu_mid_loss_kernel(y_true_ref, y_pred_ref, out_ref, *,
                        mid, pi, n_rows, n_cols, row_tile, steps_per_core,
                        last_block):
    p = pl.program_id(0)          # core (parallel) axis
    i = pl.program_id(1)          # reduction (arbitrary) axis

    # out_ref is this core's private, VMEM-resident lane-dense partial-sum
    # slab; it is only written back to HBM once per core.
    @pl.when(i == 0)
    def _():
        out_ref[...] = jnp.zeros_like(out_ref)

    block = p * steps_per_core + i          # un-clamped block index

    # Skip clamped duplicate blocks entirely (cores whose trailing steps run
    # past the end re-read the last block via the clamped index_map, but must
    # not recompute or re-accumulate it).
    @pl.when(block <= last_block)
    def _():
        eps = jnp.float32(1e-6)
        g = row_tile // 128

        yt = y_true_ref[...].astype(jnp.float32)
        yp = y_pred_ref[...].astype(jnp.float32)

        # Three class-axis (lane) reductions; the (1 - y_true) branch is
        # recovered algebraically:
        #   sum((1-yt)*yp) = sum(yp) - sum(yt*yp),   sum(1-yt) = C - sum(yt)
        s_ytyp = jnp.sum(yt * yp, axis=1, keepdims=True)      # (TM, 1)
        s_yt = jnp.sum(yt, axis=1, keepdims=True)              # (TM, 1)
        s_yp = jnp.sum(yp, axis=1, keepdims=True)              # (TM, 1)

        # Relayout the per-row stats to a lane-dense (1, TM//128, 128) tile so
        # the divide / log / abs epilogue runs at full lane occupancy (the
        # sublane-major (TM, 1) layout would issue one EUP/VALU vreg-op per
        # 8 rows and become the binding slot for small C).
        s_ytyp = s_ytyp.reshape(1, g, 128)
        s_yt = s_yt.reshape(1, g, 128)
        s_yp = s_yp.reshape(1, g, 128)

        # pos = -log( sum(yt*yp) / max(eps, sum(yt)) + eps )
        pos = -jnp.log(s_ytyp / jnp.maximum(eps, s_yt) + eps)
        # neg = -log( 1 - | sum((1-yt)*yp)/max(eps, sum(1-yt)) - mid | + eps )
        neg = (s_yp - s_ytyp) / jnp.maximum(eps, jnp.float32(n_cols) - s_yt)
        neg = -jnp.log(1.0 - jnp.abs(neg - jnp.float32(mid)) + eps)
        per_row = jnp.float32(pi) * pos + neg                   # (1, g, 128)

        row0 = block * row_tile

        # Full block: no row mask needed.
        @pl.when(row0 + row_tile <= n_rows)
        def _():
            out_ref[...] += per_row

        # Ragged tail block: mask rows past the true batch size (the padded
        # part of the last VMEM tile contains uninitialized data).
        @pl.when(row0 + row_tile > n_rows)
        def _():
            rows = (row0
                    + lax.broadcasted_iota(jnp.int32, (1, g, 128), 1) * 128
                    + lax.broadcasted_iota(jnp.int32, (1, g, 128), 2))
            out_ref[...] += jnp.where(rows < n_rows, per_row, 0.0)


def _round_up(x, m):
    return ((x + m - 1) // m) * m


def _vmem_capacity_bytes():
    try:
        return int(pltpu.get_tpu_info().vmem_capacity_bytes)
    except Exception:
        return 64 * 1024 * 1024      # conservative default (v7x-sized VMEM)


def _default_num_cores():
    # v5e / v6e expose a single TensorCore; v4 / v5p / v7x have two.
    try:
        kind = jax.devices()[0].device_kind.lower()
    except Exception:
        return 1
    if "lite" in kind or "v5e" in kind or "v6e" in kind:
        return 1
    return 2


def pu_mid_loss(y_true, y_pred, *, mid=0.0, pi=0.1, row_tile=None, num_cores=None):
    """Mean over the batch of pi * pos_loss + neg_loss (see PU_mid_loss.forward).

    y_true / y_pred are [N, C] with classes on the lane axis.  Inputs may be
    bfloat16 (exact for 0/1 y_true) to halve HBM traffic on this
    bandwidth-bound reduction; they are upcast to float32 inside the kernel.
    """
    assert y_true.shape == y_pred.shape and y_true.ndim == 2
    n, c = y_true.shape

    # Pad the class axis to a lane multiple if needed (rare; costs one extra
    # HBM pass).  Zero padding is neutral for all three reductions, and the
    # sum(1-yt) = C - sum(yt) identity uses the *original* C below.
    c_pad = 128 * pl.cdiv(c, 128)
    if c_pad != c:
        y_true = jnp.pad(y_true, ((0, 0), (0, c_pad - c)))
        y_pred = jnp.pad(y_pred, ((0, 0), (0, c_pad - c)))

    bytes_per_row = c_pad * (jnp.dtype(y_true.dtype).itemsize +
                             jnp.dtype(y_pred.dtype).itemsize)

    # Generation-aware VMEM budgets (v5e/v6e: 128 MiB physical, v7x: 64 MiB).
    vmem_cap = _vmem_capacity_bytes()
    if vmem_cap >= 96 * 1024 * 1024:          # v5e / v6e
        in_budget = 48 * 1024 * 1024           # 2 inputs x 2 pipeline buffers
        vmem_ceiling = 100 * 1024 * 1024
    else:                                      # v7x (or unknown -> conservative)
        in_budget = 20 * 1024 * 1024
        vmem_ceiling = 48 * 1024 * 1024

    # TODO(synk): the class axis is not tiled; extremely wide C would need a
    # second reduction grid axis carrying partial s_* sums.
    if 2 * 128 * bytes_per_row > vmem_ceiling:
        raise ValueError(f"class dimension C={c} too wide for the un-tiled kernel")

    if num_cores is None:
        num_cores = _default_num_cores()

    if row_tile is None:
        # Size the batch tile by bytes per grid step (not a fixed row count) so
        # the ~0.35 us per-step pipeline overhead is amortized.
        row_tile = (in_budget // 2) // max(1, bytes_per_row)
        row_tile = min(row_tile, 65536)
    row_tile = min(row_tile, _round_up(n, 128))
    row_tile = max(128, _round_up(row_tile, 128))   # lane-dense epilogue needs %128

    total_blocks = pl.cdiv(n, row_tile)
    num_cores = max(1, min(num_cores, total_blocks))
    steps_per_core = pl.cdiv(total_blocks, num_cores)
    last_block = total_blocks - 1
    g = row_tile // 128

    # Explicit scoped-VMEM limit: double-buffered inputs plus headroom for the
    # kernel's tile-sized f32 temporaries (yt*yp etc.).
    in_foot = 2 * row_tile * bytes_per_row
    tmp_foot = 2 * row_tile * c_pad * 4
    vmem_limit = min(vmem_ceiling,
                     max(32 * 1024 * 1024, in_foot + tmp_foot + (4 << 20)))

    kernel = functools.partial(
        _pu_mid_loss_kernel,
        mid=float(mid), pi=float(pi), n_rows=n, n_cols=c,
        row_tile=row_tile, steps_per_core=steps_per_core, last_block=last_block)

    def in_index_map(p, i):
        # Clamp so cores whose remaining steps run past the end re-read the
        # last valid block; the kernel skips their compute entirely.
        return (jnp.minimum(p * steps_per_core + i, last_block), 0)

    out = pl.pallas_call(
        kernel,
        out_shape=jax.ShapeDtypeStruct((num_cores, g, 128), jnp.float32),
        grid_spec=pltpu.PrefetchScalarGridSpec(
            num_scalar_prefetch=0,
            grid=(num_cores, steps_per_core),
            in_specs=[
                pl.BlockSpec((row_tile, c_pad), in_index_map),
                pl.BlockSpec((row_tile, c_pad), in_index_map),
            ],
            # One private lane-dense partial-sum slab per core (no race).
            out_specs=pl.BlockSpec((1, g, 128), lambda p, i: (p, 0, 0)),
        ),
        compiler_params=pltpu.CompilerParams(
            dimension_semantics=("parallel", "arbitrary"),
            vmem_limit_bytes=vmem_limit,
        ),
    )(y_true, y_pred)

    # Tiny final reduce over the per-core lane-dense partial sums.
    return jnp.sum(out) / jnp.float32(n)


def _reference(y_true, y_pred, mid=0.0, pi=0.1):
    eps = 1e-6
    yt = y_true.astype(jnp.float32)
    yp = y_pred.astype(jnp.float32)
    pos = jnp.sum(yt * yp, 1) / jnp.maximum(eps, jnp.sum(yt, 1))
    pos = -jnp.log(pos + eps)
    neg = jnp.sum((1 - yt) * yp, 1) / jnp.maximum(eps, jnp.sum(1 - yt, 1))
    neg = jnp.abs(neg - mid)
    neg = -jnp.log(1 - neg + eps)
    return jnp.mean(pi * pos + neg)


def _check(y_true, y_pred, mid, pi, **kw):
    loss = pu_mid_loss(y_true, y_pred, mid=mid, pi=pi, **kw)
    jax.block_until_ready(loss)
    ref = _reference(y_true, y_pred, mid=mid, pi=pi)
    # f32 (vs torch f64) -> slightly loose tolerance.
    assert jnp.allclose(loss, ref, rtol=2e-3, atol=2e-4), (loss, ref)
    return loss


if __name__ == "__main__":
    key = jax.random.PRNGKey(0)
    k1, k2, k3, k4, k5, k6, k7, k8 = jax.random.split(key, 8)

    # Main case: small batch x class-probability vector (single block).
    N, C = 16, 128
    y_true = (jax.random.uniform(k1, (N, C)) > 0.8).astype(jnp.float32)
    y_pred = jax.nn.softmax(jax.random.normal(k2, (N, C)), axis=-1)
    _check(y_true, y_pred, mid=0.0, pi=0.1)

    # Multi-block / multi-core path with a clamped (skipped) trailing step and
    # a ragged tail block (300 = 2*128 + 44).
    N2, C2 = 300, 128
    yt2 = (jax.random.uniform(k3, (N2, C2)) > 0.7).astype(jnp.float32)
    yp2 = jax.nn.softmax(jax.random.normal(k4, (N2, C2)), axis=-1)
    _check(yt2, yp2, mid=0.1, pi=0.2, row_tile=128, num_cores=2)

    # Ragged batch (N not a multiple of the sublane tile), wider class axis.
    N3, C3 = 19, 256
    yt3 = (jax.random.uniform(k5, (N3, C3)) > 0.85).astype(jnp.float32)
    yp3 = jax.nn.softmax(jax.random.normal(k6, (N3, C3)), axis=-1)
    _check(yt3, yp3, mid=0.0, pi=0.1)

    # C not a multiple of 128 -> lane-padding path in the wrapper.
    N4, C4 = 24, 100
    yt4 = (jax.random.uniform(k7, (N4, C4)) > 0.75).astype(jnp.float32)
    yp4 = jax.nn.softmax(jax.random.normal(k8, (N4, C4)), axis=-1)
    _check(yt4, yp4, mid=0.05, pi=0.1)

    print("KERNEL_OK")
</pallas_src>

<mosaic_0001>
module attributes {stable_mosaic.version = 11 : i64} {
  func.func @_pu_mid_loss_kernel(%arg0: i32, %arg1: i32, %arg2: memref<128x128xf32, #tpu.memory_space<vmem>>, %arg3: memref<128x128xf32, #tpu.memory_space<vmem>>, %arg4: memref<1x1x128xf32, #tpu.memory_space<vmem>>) attributes {dimension_semantics = [#tpu.dimension_semantics<parallel>, #tpu.dimension_semantics<arbitrary>], iteration_bounds = array<i64: 1, 1>, scalar_prefetch = 0 : i64, scratch_operands = 0 : i64, tpu.core_type = #tpu.core_type<tc>, window_params = [{transform_indices = @transform_0, window_bounds = array<i64: 128, 128>}, {transform_indices = @transform_1, window_bounds = array<i64: 128, 128>}, {transform_indices = @transform_2, window_bounds = array<i64: 1, 1, 128>}]} {
    %c0_i32 = arith.constant 0 : i32
    %0 = arith.cmpi eq, %arg1, %c0_i32 : i32
    %1 = arith.extui %0 : i1 to i32
    %c0_i32_0 = arith.constant 0 : i32
    %2 = arith.cmpi ne, %1, %c0_i32_0 : i32
    scf.if %2 {
      %cst = arith.constant 0.000000e+00 : f32
      %8 = vector.broadcast %cst : f32 to vector<1x1x128xf32>
      %c0 = arith.constant 0 : index
      %c0_3 = arith.constant 0 : index
      %c0_4 = arith.constant 0 : index
      %9 = vector.load %arg4[%c0, %c0_3, %c0_4] : memref<1x1x128xf32, #tpu.memory_space<vmem>>, vector<1x1x128xf32>
      tpu.vector_store %arg4[%c0, %c0_3, %c0_4], %8 {strides = array<i32>} : memref<1x1x128xf32, #tpu.memory_space<vmem>>, vector<1x1x128xf32>,
    } else {
    }
    %c1_i32 = arith.constant 1 : i32
    %3 = arith.muli %arg0, %c1_i32 : i32
    %4 = arith.addi %3, %arg1 : i32
    %c0_i32_1 = arith.constant 0 : i32
    %5 = arith.cmpi sle, %4, %c0_i32_1 : i32
    %6 = arith.extui %5 : i1 to i32
    %c0_i32_2 = arith.constant 0 : i32
    %7 = arith.cmpi ne, %6, %c0_i32_2 : i32
    scf.if %7 {
      %c0 = arith.constant 0 : index
      %c0_3 = arith.constant 0 : index
      %8 = vector.load %arg2[%c0, %c0_3] : memref<128x128xf32, #tpu.memory_space<vmem>>, vector<128x128xf32>
      %c0_4 = arith.constant 0 : index
      %c0_5 = arith.constant 0 : index
      %9 = vector.load %arg3[%c0_4, %c0_5] : memref<128x128xf32, #tpu.memory_space<vmem>>, vector<128x128xf32>
      %10 = arith.mulf %8, %9 : vector<128x128xf32>
      %cst = arith.constant dense<0.000000e+00> : vector<128xf32>
      %11 = vector.multi_reduction <add>, %10, %cst [1] : vector<128x128xf32> to vector<128xf32>
      %12 = vector.shape_cast %11 : vector<128xf32> to vector<128x1xf32>
      %cst_6 = arith.constant dense<0.000000e+00> : vector<128xf32>
      %13 = vector.multi_reduction <add>, %8, %cst_6 [1] : vector<128x128xf32> to vector<128xf32>
      %14 = vector.shape_cast %13 : vector<128xf32> to vector<128x1xf32>
      %cst_7 = arith.constant dense<0.000000e+00> : vector<128xf32>
      %15 = vector.multi_reduction <add>, %9, %cst_7 [1] : vector<128x128xf32> to vector<128xf32>
      %16 = vector.shape_cast %15 : vector<128xf32> to vector<128x1xf32>
      %17 = vector.shape_cast %12 : vector<128x1xf32> to vector<1x1x128xf32>
      %18 = vector.shape_cast %14 : vector<128x1xf32> to vector<1x1x128xf32>
      %19 = vector.shape_cast %16 : vector<128x1xf32> to vector<1x1x128xf32>
      %cst_8 = arith.constant 9.99999997E-7 : f32
      %20 = vector.broadcast %cst_8 : f32 to vector<1x1x128xf32>
      %21 = arith.maximumf %20, %18 : vector<1x1x128xf32>
      %22 = arith.divf %17, %21 : vector<1x1x128xf32>
      %cst_9 = arith.constant 9.99999997E-7 : f32
      %23 = vector.broadcast %cst_9 : f32 to vector<1x1x128xf32>
      %24 = arith.addf %22, %23 : vector<1x1x128xf32>
      %25 = math.log %24 : vector<1x1x128xf32>
      %cst_10 = arith.constant 0.000000e+00 : f32
      %26 = vector.broadcast %cst_10 : f32 to vector<1x1x128xf32>
      %27 = arith.subf %26, %25 : vector<1x1x128xf32>
      %28 = arith.subf %19, %17 : vector<1x1x128xf32>
      %cst_11 = arith.constant 1.280000e+02 : f32
      %29 = vector.broadcast %cst_11 : f32 to vector<1x1x128xf32>
      %30 = arith.subf %29, %18 : vector<1x1x128xf32>
      %cst_12 = arith.constant 9.99999997E-7 : f32
      %31 = vector.broadcast %cst_12 : f32 to vector<1x1x128xf32>
      %32 = arith.maximumf %31, %30 : vector<1x1x128xf32>
      %33 = arith.divf %28, %32 : vector<1x1x128xf32>
      %cst_13 = arith.constant 0.000000e+00 : f32
      %34 = vector.broadcast %cst_13 : f32 to vector<1x1x128xf32>
      %35 = arith.subf %33, %34 : vector<1x1x128xf32>
      %36 = math.absf %35 : vector<1x1x128xf32>
      %cst_14 = arith.constant 1.000000e+00 : f32
      %37 = vector.broadcast %cst_14 : f32 to vector<1x1x128xf32>
      %38 = arith.subf %37, %36 : vector<1x1x128xf32>
      %cst_15 = arith.constant 9.99999997E-7 : f32
      %39 = vector.broadcast %cst_15 : f32 to vector<1x1x128xf32>
      %40 = arith.addf %38, %39 : vector<1x1x128xf32>
      %41 = math.log %40 : vector<1x1x128xf32>
      %cst_16 = arith.constant 0.000000e+00 : f32
      %42 = vector.broadcast %cst_16 : f32 to vector<1x1x128xf32>
      %43 = arith.subf %42, %41 : vector<1x1x128xf32>
      %cst_17 = arith.constant 1.000000e-01 : f32
      %44 = vector.broadcast %cst_17 : f32 to vector<1x1x128xf32>
      %45 = arith.mulf %44, %27 : vector<1x1x128xf32>
      %46 = arith.addf %45, %43 : vector<1x1x128xf32>
      %c128_i32 = arith.constant 128 : i32
      %47 = arith.muli %4, %c128_i32 : i32
      %c128_i32_18 = arith.constant 128 : i32
      %48 = arith.addi %47, %c128_i32_18 : i32
      %c16_i32 = arith.constant 16 : i32
      %49 = arith.cmpi sle, %48, %c16_i32 : i32
      %50 = arith.extui %49 : i1 to i32
      %c0_i32_19 = arith.constant 0 : i32
      %51 = arith.cmpi ne, %50, %c0_i32_19 : i32
      scf.if %51 {
        %c0_23 = arith.constant 0 : index
        %c0_24 = arith.constant 0 : index
        %c0_25 = arith.constant 0 : index
        %56 = vector.load %arg4[%c0_23, %c0_24, %c0_25] : memref<1x1x128xf32, #tpu.memory_space<vmem>>, vector<1x1x128xf32>
        %57 = arith.addf %56, %46 : vector<1x1x128xf32>
        %c0_26 = arith.constant 0 : index
        %c0_27 = arith.constant 0 : index
        %c0_28 = arith.constant 0 : index
        %58 = vector.load %arg4[%c0_26, %c0_27, %c0_28] : memref<1x1x128xf32, #tpu.memory_space<vmem>>, vector<1x1x128xf32>
        tpu.vector_store %arg4[%c0_26, %c0_27, %c0_28], %57 {strides = array<i32>} : memref<1x1x128xf32, #tpu.memory_space<vmem>>, vector<1x1x128xf32>,
      } else {
      }
      %c128_i32_20 = arith.constant 128 : i32
      %52 = arith.addi %47, %c128_i32_20 : i32
      %c16_i32_21 = arith.constant 16 : i32
      %53 = arith.cmpi sgt, %52, %c16_i32_21 : i32
      %54 = arith.extui %53 : i1 to i32
      %c0_i32_22 = arith.constant 0 : i32
      %55 = arith.cmpi ne, %54, %c0_i32_22 : i32
      scf.if %55 {
        %56 = tpu.iota {dimensions = array<i32: 1>} : vector<1x1x128xi32>
        %c128_i32_23 = arith.constant 128 : i32
        %57 = vector.broadcast %c128_i32_23 : i32 to vector<1x1x128xi32>
        %58 = arith.muli %56, %57 : vector<1x1x128xi32>
        %59 = vector.broadcast %47 : i32 to vector<1x1x128xi32>
        %60 = arith.addi %59, %58 : vector<1x1x128xi32>
        %61 = tpu.iota {dimensions = array<i32: 2>} : vector<1x1x128xi32>
        %62 = arith.addi %60, %61 : vector<1x1x128xi32>
        %c0_24 = arith.constant 0 : index
        %c0_25 = arith.constant 0 : index
        %c0_26 = arith.constant 0 : index
        %63 = vector.load %arg4[%c0_24, %c0_25, %c0_26] : memref<1x1x128xf32, #tpu.memory_space<vmem>>, vector<1x1x128xf32>
        %c16_i32_27 = arith.constant 16 : i32
        %64 = vector.broadcast %c16_i32_27 : i32 to vector<1x1x128xi32>
        %65 = arith.cmpi slt, %62, %64 : vector<1x1x128xi32>
        %cst_28 = arith.constant 0.000000e+00 : f32
        %66 = vector.broadcast %cst_28 : f32 to vector<1x1x128xf32>
        %67 = arith.select %65, %46, %66 : vector<1x1x128xi1>, vector<1x1x128xf32>
        %68 = arith.addf %63, %67 : vector<1x1x128xf32>
        %c0_29 = arith.constant 0 : index
        %c0_30 = arith.constant 0 : index
        %c0_31 = arith.constant 0 : index
        %69 = vector.load %arg4[%c0_29, %c0_30, %c0_31] : memref<1x1x128xf32, #tpu.memory_space<vmem>>, vector<1x1x128xf32>
        tpu.vector_store %arg4[%c0_29, %c0_30, %c0_31], %68 {strides = array<i32>} : memref<1x1x128xf32, #tpu.memory_space<vmem>>, vector<1x1x128xf32>,
      } else {
      }
    } else {
    }
    return
  }
  func.func @transform_0(%arg0: i32, %arg1: i32) -> (i32, i32) {
    %c1_i32 = arith.constant 1 : i32
    %0 = arith.muli %arg0, %c1_i32 : i32
    %1 = arith.addi %0, %arg1 : i32
    %c0_i32 = arith.constant 0 : i32
    %2 = arith.minsi %1, %c0_i32 : i32
    %c0_i32_0 = arith.constant 0 : i32
    %c0_i32_1 = arith.constant 0 : i32
    return %2, %c0_i32_0 : i32, i32
  }
  func.func @transform_1(%arg0: i32, %arg1: i32) -> (i32, i32) {
    %c1_i32 = arith.constant 1 : i32
    %0 = arith.muli %arg0, %c1_i32 : i32
    %1 = arith.addi %0, %arg1 : i32
    %c0_i32 = arith.constant 0 : i32
    %2 = arith.minsi %1, %c0_i32 : i32
    %c0_i32_0 = arith.constant 0 : i32
    %c0_i32_1 = arith.constant 0 : i32
    return %2, %c0_i32_0 : i32, i32
  }
  func.func @transform_2(%arg0: i32, %arg1: i32) -> (i32, i32, i32) {
    %c0_i32 = arith.constant 0 : i32
    %c0_i32_0 = arith.constant 0 : i32
    %c0_i32_1 = arith.constant 0 : i32
    return %arg0, %c0_i32, %c0_i32_0 : i32, i32, i32
  }
}

</mosaic_0001>

<bundles_post_ra>
// kernel: tpu_custom_call.1
= control target key start
LH: loop header
LB: loop body
LE: loop exit
PB: predicated region body
PF: predicated region fallthrough
CT: control target
= control target key end

     0   :  { %7 = vsyncpa [#allocation3], 0  ;;  %s2969_s0 = inlined_call_operand.hbm [shape: f32[16,128], index: 0, kind: input, shape index: {}]   ;;  %s2970_s1 = inlined_call_operand.hbm [shape: f32[16,128], index: 1, kind: input, shape index: {}]   ;;  %s2971_s2 = inlined_call_operand.hbm [shape: f32[1,1,128], index: 2, kind: output, shape index: {}]  }
   0x1   :  { %8 = vsyncpa [#allocation6], 0 }
   0x2   :  { %9 = vsyncpa [#allocation4], 0 }
   0x3   :  { %20 = vsyncadd [#allocation3], 1792  ;;  %s25_s11 = sshll.u32 %s2969_s0, 4  ;;  %s1713_s12 = smov [#allocation2]   ;;  %s26_s11 = int_to_ptr.hbm [resolvable:$true] %s25_s11 }
   0x4   :  { %s27_s13 = sshll.u32 %s1713_s12, 4  ;;  %s1714_s14 = smov 128   ;;  %s28_s13 = int_to_ptr.vmem [resolvable:$true] %s27_s13 }
   0x5   :  { %s1715_s15 = smov 8  }
   0x6   :  { %33 = dma.hbm_to_vmem [thread:$0]  %s26_s11, 256, %s28_s13, [#allocation3], %s1714_s14, %s1714_s14, %s1715_s15  }
   0x7   :  { %44 = vsyncadd [#allocation6], 1792  ;;  %s49_s18 = sshll.u32 %s2970_s1, 4  ;;  %s1716_s19 = smov [#allocation5]   ;;  %s50_s18 = int_to_ptr.hbm [resolvable:$true] %s49_s18 }
   0x8   :  { %s51_s20 = sshll.u32 %s1716_s19, 4  ;;  %s52_s20 = int_to_ptr.vmem [resolvable:$true] %s51_s20 }
   0x9   :  { %57 = dma.hbm_to_vmem [thread:$0]  %s50_s18, 256, %s52_s20, [#allocation6], %s1714_s14, %s1714_s14, %s1715_s15  }
   0xa   :  { %1707 = dma.done.wait [#allocation3], 2048  }
   0xb   :  { %1708 = vsyncadd [#allocation3], 4294965248 }
   0xc   :  { %1709 = dma.done.wait [#allocation6], 2048  }
   0xd   :  { %1710 = vsyncadd [#allocation6], 4294965248  ;;  %v92_v0 = vld [vmem:[#allocation2 + $0x20] sm:$0xff]  ;;  %v90_v2 = vld [vmem:[#allocation2 + $0x10] sm:$0xff]  ;;  %s1718_s0 = smov [#allocation7]   ;;  %s1486_s23 = sshll.u32 %s2971_s2, 4  ;;  %s1487_s23 = int_to_ptr.hbm [resolvable:$true] %s1486_s23 }
   0xe   :  { %v1740_v1 = vld [vmem:[#allocation5 + $0x20] sm:$0xff]  ;;  %v1743_v4 = vld [vmem:[#allocation5 + $0x10] sm:$0xff]  ;;  %v93_v9 = vld [vmem:[#allocation2 + $0x28] sm:$0xff]  ;;  %s1484_s1 = sshll.u32 %s1718_s0, 4  ;;  %s1485_s1 = int_to_ptr.vmem [resolvable:$true] %s1484_s1 }
   0xf   :  { %v124_v3 = vmul.f32 %v1740_v1, %v92_v0  ;;  %v88_v5 = vld [vmem:[#allocation2] sm:$0xff]  ;;  %v122_v7 = vmul.f32 %v1743_v4, %v90_v2  ;;  %v1749_v10 = vld [vmem:[#allocation5 + $0x28] sm:$0xff]  ;;  %v91_v11 = vld [vmem:[#allocation2 + $0x18] sm:$0xff] }
  0x10   :  { %v1745_v6 = vld [vmem:[#allocation5] sm:$0xff]  ;;  %v1751_v12 = vld [vmem:[#allocation5 + $0x18] sm:$0xff]  ;;  %v89_v13 = vld [vmem:[#allocation2 + $0x8] sm:$0xff]  ;;  %v125_v15 = vmul.f32 %v1749_v10, %v93_v9 }
  0x11   :  { %v120_v8 = vmul.f32 %v1745_v6, %v88_v5  ;;  %144 = vadd.xlane.f32.xlu2 %v124_v3  ;;  %140 = vadd.xlane.f32.xlu1 %v122_v7  ;;  %v105_v14 = vld [vmem:[#allocation5 + $0x8] sm:$0xff]  ;;  %v123_v16 = vmul.f32 %v1751_v12, %v91_v11  ;;  %v96_v18 = vld [vmem:[#allocation2 + $0x40] sm:$0xff]  ;;  %v95_v20 = vld [vmem:[#allocation2 + $0x38] sm:$0xff] }
  0x12   :  { %v121_v17 = vmul.f32 %v105_v14, %v89_v13  ;;  %v112_v19 = vld [vmem:[#allocation5 + $0x40] sm:$0xff]  ;;  %v111_v21 = vld [vmem:[#allocation5 + $0x38] sm:$0xff]  ;;  %v94_v22 = vld [vmem:[#allocation2 + $0x30] sm:$0xff] }
  0x13   :  { %136 = vadd.xlane.f32.xlu0 %v120_v8  ;;  %v110_v23 = vld [vmem:[#allocation5 + $0x30] sm:$0xff]  ;;  %v128_v24 = vmul.f32 %v112_v19, %v96_v18  ;;  %v127_v25 = vmul.f32 %v111_v21, %v95_v20  ;;  %v99_v27 = vld [vmem:[#allocation2 + $0x58] sm:$0xff]  ;;  %v97_v31 = vld [vmem:[#allocation2 + $0x48] sm:$0xff] }
  0x14   :  { %v126_v26 = vmul.f32 %v110_v23, %v94_v22  ;;  %v115_v28 = vld [vmem:[#allocation5 + $0x58] sm:$0xff]  ;;  %v98_v29 = vld [vmem:[#allocation2 + $0x50] sm:$0xff]  ;;  %v113_v32 = vld [vmem:[#allocation5 + $0x48] sm:$0xff] }
  0x15   :  { %v114_v30 = vld [vmem:[#allocation5 + $0x50] sm:$0xff]  ;;  %v131_v33 = vmul.f32 %v115_v28, %v99_v27  ;;  %v129_v35 = vmul.f32 %v113_v32, %v97_v31  ;;  %v101_v36 = vld [vmem:[#allocation2 + $0x68] sm:$0xff]  ;;  %v100_v38 = vld [vmem:[#allocation2 + $0x60] sm:$0xff] }
  0x16   :  { %v130_v34 = vmul.f32 %v114_v30, %v98_v29  ;;  %v117_v37 = vld [vmem:[#allocation5 + $0x68] sm:$0xff]  ;;  %v116_v39 = vld [vmem:[#allocation5 + $0x60] sm:$0xff]  ;;  %v103_v42 = vld [vmem:[#allocation2 + $0x78] sm:$0xff] }
  0x17   :  { %v133_v40 = vmul.f32 %v117_v37, %v101_v36  ;;  %v132_v41 = vmul.f32 %v116_v39, %v100_v38  ;;  %v102_v43 = vld [vmem:[#allocation2 + $0x70] sm:$0xff]  ;;  %v119_v46 = vld [vmem:[#allocation5 + $0x78] sm:$0xff] }
  0x18   :  { %v118_v44 = vld [vmem:[#allocation5 + $0x70] sm:$0xff]  ;;  %v135_v49 = vmul.f32 %v119_v46, %v103_v42 }
  0x19   :  { %146 = vadd.xlane.f32.xlu2 %v125_v15  ;;  %142 = vadd.xlane.f32.xlu1 %v123_v16  ;;  %v134_v45 = vmul.f32 %v118_v44, %v102_v43 }
  0x1b   :  { %138 = vadd.xlane.f32.xlu0 %v121_v17 }
  0x21   :  { %152 = vadd.xlane.f32.xlu2 %v128_v24  ;;  %150 = vadd.xlane.f32.xlu1 %v127_v25 }
  0x23   :  { %148 = vadd.xlane.f32.xlu0 %v126_v26 }
  0x29   :  { %158 = vadd.xlane.f32.xlu2 %v131_v33  ;;  %156 = vadd.xlane.f32.xlu1 %v130_v34 }
  0x2b   :  { %154 = vadd.xlane.f32.xlu0 %v129_v35 }
  0x31   :  { %168 = vadd.xlane.f32.xlu2 %v88_v5  ;;  %162 = vadd.xlane.f32.xlu1 %v133_v40 }
  0x33   :  { %160 = vadd.xlane.f32.xlu0 %v132_v41 }
  0x39   :  { %174 = vadd.xlane.f32.xlu2 %v91_v11  ;;  %172 = vadd.xlane.f32.xlu1 %v90_v2 }
  0x3b   :  { %170 = vadd.xlane.f32.xlu0 %v89_v13 }
  0x41   :  { %180 = vadd.xlane.f32.xlu2 %v94_v22  ;;  %178 = vadd.xlane.f32.xlu1 %v93_v9 }
  0x43   :  { %176 = vadd.xlane.f32.xlu0 %v92_v0 }
  0x49   :  { %186 = vadd.xlane.f32.xlu2 %v97_v31  ;;  %184 = vadd.xlane.f32.xlu1 %v96_v18 }
  0x4b   :  { %182 = vadd.xlane.f32.xlu0 %v95_v20 }
  0x51   :  { %192 = vadd.xlane.f32.xlu2 %v100_v38  ;;  %190 = vadd.xlane.f32.xlu1 %v99_v27 }
  0x53   :  { %188 = vadd.xlane.f32.xlu0 %v98_v29 }
  0x59   :  { %198 = vadd.xlane.f32.xlu2 %v103_v42  ;;  %196 = vadd.xlane.f32.xlu1 %v102_v43 }
  0x5b   :  { %194 = vadd.xlane.f32.xlu0 %v101_v36 }
  0x61   :  { %204 = vadd.xlane.f32.xlu2 %v1743_v4  ;;  %202 = vadd.xlane.f32.xlu1 %v105_v14 }
  0x63   :  { %200 = vadd.xlane.f32.xlu0 %v1745_v6 }
  0x69   :  { %210 = vadd.xlane.f32.xlu2 %v1749_v10  ;;  %208 = vadd.xlane.f32.xlu1 %v1740_v1 }
  0x6b   :  { %206 = vadd.xlane.f32.xlu0 %v1751_v12 }
  0x71   :  { %216 = vadd.xlane.f32.xlu2 %v112_v19  ;;  %214 = vadd.xlane.f32.xlu1 %v111_v21 }
  0x73   :  { %212 = vadd.xlane.f32.xlu0 %v110_v23 }
  0x79   :  { %222 = vadd.xlane.f32.xlu2 %v115_v28  ;;  %220 = vadd.xlane.f32.xlu1 %v114_v30 }
  0x7b   :  { %218 = vadd.xlane.f32.xlu0 %v113_v32 }
  0x81   :  { %164 = vadd.xlane.f32.xlu2 %v134_v45  ;;  %226 = vadd.xlane.f32.xlu1 %v117_v37 }
  0x83   :  { %224 = vadd.xlane.f32.xlu0 %v116_v39 }
  0x84   :  { %v1760_v47 = vpop.xlane.xlu2 %144  ;;  %v1762_v48 = vpop.xlane.xlu1 %140 }
  0x85   :  { %3035 = vst [vmem:[#allocation11_spill] sm:$0xff] %v1760_v47 }
  0x86   :  { %v1764_v50 = vpop.xlane.xlu0 %136 }
  0x89   :  { %230 = vadd.xlane.f32.xlu2 %v119_v46  ;;  %166 = vadd.xlane.f32.xlu1 %v135_v49 }
  0x8b   :  { %228 = vadd.xlane.f32.xlu0 %v118_v44 }
  0x8c   :  { %v1766_v51 = vpop.xlane.xlu1 %142  ;;  %v1768_v52 = vpop.xlane.xlu2 %146 }
  0x8d   :  { %3036 = vst [vmem:[#allocation12_spill] sm:$0xff] %v1766_v51 }
  0x8e   :  { %3037 = vst [vmem:[#allocation13_spill] sm:$0xff] %v1768_v52  ;;  %v1770_v53 = vpop.xlane.xlu0 %138 }
  0x94   :  { %v1772_v54 = vpop.xlane.xlu1 %150  ;;  %v1774_v55 = vpop.xlane.xlu2 %152 }
  0x95   :  { %3038 = vst [vmem:[#allocation14_spill] sm:$0xff] %v1772_v54 }
  0x96   :  { %3039 = vst [vmem:[#allocation15_spill] sm:$0xff] %v1774_v55  ;;  %v1776_v56 = vpop.xlane.xlu0 %148 }
  0x97   :  { %3040 = vst [vmem:[#allocation16_spill] sm:$0xff] %v1776_v56 }
  0x9c   :  { %v1778_v57 = vpop.xlane.xlu1 %156  ;;  %v1780_v58 = vpop.xlane.xlu2 %158 }
  0x9d   :  { %3041 = vst [vmem:[#allocation17_spill] sm:$0xff] %v1778_v57 }
  0x9e   :  { %3042 = vst [vmem:[#allocation18_spill] sm:$0xff] %v1780_v58  ;;  %v1782_v59 = vpop.xlane.xlu0 %154 }
  0x9f   :  { %3043 = vst [vmem:[#allocation19_spill] sm:$0xff] %v1782_v59 }
  0xa4   :  { %v1784_v60 = vpop.xlane.xlu1 %162  ;;  %v169_v61 = vpop.xlane.xlu2 %168 }
  0xa5   :  { %3044 = vst [vmem:[#allocation20_spill] sm:$0xff] %v1784_v60  ;;  %v1788_v63 = vmax.f32 %v169_v61, 1e-06  ;;  %v568_v10 = vsub.f32 128.0, %v169_v61  ;;  %v3158_v61 = vld [vmem:[#allocation13_spill] sm:$0xff] }
  0xa6   :  { %v1786_v62 = vpop.xlane.xlu0 %160 }
  0xa7   :  { %3045 = vst [vmem:[#allocation21_spill] sm:$0xff] %v1786_v62  ;;  %1507 = vrcp.f32 %v1788_v63  ;;  %v259_v17 = vand.u32 2147483648, %v1788_v63  ;;  %v1819_v18 = vmax.f32 %v568_v10, 1e-06  ;;  %vm253_vm0 = vweird.f32 %v1788_v63 }
  0xa9   :  { %v1842_v30 = vor.u32 1.1754944e-38, %v259_v17 }
  0xac   :  { %v173_v0 = vpop.xlane.xlu1 %172  ;;  %v175_v1 = vpop.xlane.xlu2 %174 }
  0xad   :  { %v1791_v2 = vmax.f32 %v175_v1, 1e-06  ;;  %v1793_v3 = vmax.f32 %v173_v0, 1e-06  ;;  %v1795_v5 = vpop.eup %1507  ;;  %v570_v15 = vsub.f32 128.0, %v173_v0  ;;  %v571_v19 = vsub.f32 128.0, %v175_v1 }
  0xae   :  { %v171_v4 = vpop.xlane.xlu0 %170  ;;  %v249_v8 = vmul.f32 %v1795_v5, %v1788_v63  ;;  %vm254_vm1 = vweird.f32 %v1795_v5 }
  0xaf   :  { %3046 = vst [vmem:[#allocation22_spill] sm:$0xff] %v1791_v2  ;;  %1509 = vrcp.f32 %v1791_v2  ;;  %v1805_v9 = vmax.f32 %v171_v4, 1e-06  ;;  %v1829_v23 = vmax.f32 %v570_v15, 1e-06  ;;  %v304_v27 = vand.u32 2147483648, %v1791_v2  ;;  %vm1879_vm3 = vmor %vm253_vm0, %vm254_vm1 }
  0xb0   :  { %1511 = vrcp.f32 %v1793_v3  ;;  %v250_v14 = vsub.f32 1.0, %v249_v8  ;;  %v1845_v31 = vmax.f32 %v571_v19, 1e-06  ;;  %v569_v32 = vsub.f32 128.0, %v171_v4 }
  0xb1   :  { %1513 = vrcp.f32 %v1805_v9  ;;  %v289_v33 = vand.u32 2147483648, %v1793_v3  ;;  %vm298_vm2 = vweird.f32 %v1791_v2  ;;  %v1863_v42 = vor.u32 1.1754944e-38, %v304_v27 }
  0xb2   :  { %v251_v22 = vmul.f32 %v1795_v5, %v250_v14  ;;  %3049 = vst [vmem:[#allocation25_spill] sm:$0xff] %v1845_v31  ;;  %v274_v45 = vand.u32 2147483648, %v1805_v9  ;;  %v1872_v46 = vmax.f32 %v569_v32, 1e-06  ;;  %vm283_vm4 = vweird.f32 %v1793_v3 }
  0xb3   :  { %3053 = vst [vmem:[#allocation29_spill] sm:$0xff] %v1863_v42  ;;  %v1884_v0 = vor.u32 1.1754944e-38, %v289_v33  ;;  %vm268_vm7 = vweird.f32 %v1805_v9 }
  0xb4   :  { %v1798_v6 = vpop.xlane.xlu1 %178  ;;  %v1800_v7 = vpop.xlane.xlu2 %180  ;;  %v1855_v37 = vadd.f32 %v1795_v5, %v251_v22 }
  0xb5   :  { %v1808_v11 = vmax.f32 %v1800_v7, 1e-06  ;;  %v1811_v12 = vmax.f32 %v1798_v6, 1e-06  ;;  %v1813_v13 = vpop.eup %1509  ;;  %v573_v49 = vsub.f32 128.0, %v1798_v6  ;;  %v574_v25 = vsub.f32 128.0, %v1800_v7 }
  0xb6   :  { %3048 = vst [vmem:[#allocation24_spill] sm:$0xff] %v1813_v13  ;;  %v1816_v16 = vpop.eup %1511  ;;  %v1822_v20 = vpop.xlane.xlu0 %176  ;;  %v294_v21 = vmul.f32 %v1813_v13, %v1791_v2  ;;  %vm299_vm6 = vweird.f32 %v1813_v13  ;;  %v3061_v7 = vmov 0 }
  0xb7   :  { %3047 = vst [vmem:[#allocation23_spill] sm:$0xff] %v1808_v11  ;;  %1515 = vrcp.f32 %v1808_v11  ;;  %v279_v26 = vmul.f32 %v1816_v16, %v1793_v3  ;;  %v1838_v28 = vmax.f32 %v1822_v20, 1e-06  ;;  %v1840_v29 = vpop.eup %1513  ;;  %vm284_vm5 = vweird.f32 %v1816_v16  ;;  %vm1943_vm9 = vmor %vm298_vm2, %vm299_vm6 }
  0xb8   :  { %1517 = vrcp.f32 %v1811_v12  ;;  %v295_v34 = vsub.f32 1.0, %v294_v21  ;;  %v264_v43 = vmul.f32 %v1840_v29, %v1805_v9  ;;  %v334_v27 = vand.u32 2147483648, %v1811_v12  ;;  %vm1970_vm12 = vmor %vm283_vm4, %vm284_vm5 }
  0xb9   :  { %1519 = vrcp.f32 %v1819_v18  ;;  %v280_v41 = vsub.f32 1.0, %v279_v26  ;;  %v1909_v26 = vor.u32 1.1754944e-38, %v274_v45  ;;  %v1913_v32 = vmax.f32 %v573_v49, 1e-06 }
  0xba   :  { %1521 = vrcp.f32 %v1829_v23  ;;  %v296_v1 = vmul.f32 %v1813_v13, %v295_v34  ;;  %v265_v19 = vsub.f32 1.0, %v264_v43  ;;  %v349_v39 = vand.u32 2147483648, %v1808_v11 }
  0xbb   :  { %1523 = vrcp.f32 %v1838_v28  ;;  %v281_v17 = vmul.f32 %v1816_v16, %v280_v41  ;;  %vm343_vm8 = vweird.f32 %v1808_v11  ;;  %v3062_v7 = vsel %vm1943_vm9, 4294967295, %v3061_v7 }
  0xbc   :  { %v1831_v24 = vpop.xlane.xlu1 %184  ;;  %v1868_v44 = vpop.xlane.xlu2 %186  ;;  %1525 = vrcp.f32 %v1845_v31  ;;  %v1918_v34 = vadd.f32 %v1813_v13, %v296_v1  ;;  %3063 = vst [vmem:[#allocation35_spill] sm:$0xff] %v3062_v7  ;;  %vm269_vm10 = vweird.f32 %v1840_v29  ;;  %vm328_vm11 = vweird.f32 %v1811_v12 }
  0xbd   :  { %v1850_v35 = vmax.f32 %v1831_v24, 1e-06  ;;  %v1852_v36 = vpop.eup %1515  ;;  %v1900_v15 = vmax.f32 %v1868_v44, 1e-06  ;;  %v1933_v1 = vadd.f32 %v1816_v16, %v281_v17  ;;  %v1949_v17 = vor.u32 1.1754944e-38, %v334_v27  ;;  %vm2010_vm15 = vmor %vm268_vm7, %vm269_vm10 }
  0xbe   :  { %3051 = vst [vmem:[#allocation27_spill] sm:$0xff] %v1852_v36  ;;  %v1860_v40 = vpop.eup %1517  ;;  %v339_v4 = vmul.f32 %v1852_v36, %v1808_v11  ;;  %v1905_v21 = vpop.xlane.xlu0 %182  ;;  %v1959_v10 = vor.u32 1.1754944e-38, %v349_v39  ;;  %v576_v62 = vsub.f32 128.0, %v1831_v24  ;;  %v1975_v58 = vmax.f32 %v574_v25, 1e-06 }
  0xbf   :  { %3050 = vst [vmem:[#allocation26_spill] sm:$0xff] %v1850_v35  ;;  %1527 = vrcp.f32 %v1850_v35  ;;  %v1890_v6 = vpop.eup %1519  ;;  %v324_v14 = vmul.f32 %v1860_v40, %v1811_v12  ;;  %v1928_v49 = vmax.f32 %v1905_v21, 1e-06  ;;  %v319_v57 = vand.u32 2147483648, %v1838_v28 }
  0xc0   :  { %3052 = vst [vmem:[#allocation28_spill] sm:$0xff] %v1860_v40  ;;  %v1907_v22 = vpop.eup %1521  ;;  %1529 = vrcp.f32 %v1872_v46  ;;  %v340_v41 = vsub.f32 1.0, %v339_v4  ;;  %v266_v4 = vmul.f32 %v1840_v29, %v265_v19  ;;  %vm344_vm13 = vweird.f32 %v1852_v36 }
  0xc1   :  { %3056 = vst [vmem:[#allocation30_spill] sm:$0xff] %v1900_v15  ;;  %v1915_v33 = vpop.eup %1523  ;;  %v325_v8 = vsub.f32 1.0, %v324_v14  ;;  %1531 = vrcp.f32 %v1900_v15  ;;  %v572_v14 = vsub.f32 128.0, %v1822_v20  ;;  %vm329_vm14 = vweird.f32 %v1860_v40  ;;  %vm2035_vm1 = vmor %vm343_vm8, %vm344_vm13 }
  0xc2   :  { %3057 = vst [vmem:[#allocation31_spill] sm:$0xff] %v1918_v34  ;;  %v1923_v45 = vpop.eup %1525  ;;  %1533 = vrcp.f32 %v1913_v32  ;;  %v309_v19 = vmul.f32 %v1915_v33, %v1838_v28  ;;  %v341_v43 = vmul.f32 %v1852_v36, %v340_v41  ;;  %v1985_v41 = vadd.f32 %v1840_v29, %v266_v4  ;;  %vm2048_vm2 = vmor %vm328_vm11, %vm329_vm14 }
  0xc3   :  { %3058 = vst [vmem:[#allocation32_spill] sm:$0xff] %v1923_v45  ;;  %v326_v20 = vmul.f32 %v1860_v40, %v325_v8  ;;  %1535 = vrcp.f32 %v1928_v49  ;;  %v1988_v56 = vmax.f32 %v572_v14, 1e-06  ;;  %v379_v4 = vand.u32 2147483648, %v1850_v35 }
  0xc4   :  { %3059 = vst [vmem:[#allocation33_spill] sm:$0xff] %v1928_v49  ;;  %v1962_v60 = vpop.xlane.xlu1 %190  ;;  %v310_v25 = vsub.f32 1.0, %v309_v19  ;;  %v1999_v24 = vadd.f32 %v1852_v36, %v341_v43  ;;  %v2002_v54 = vmax.f32 %v576_v62, 1e-06  ;;  %1537 = vrcp.f32 %v1975_v58  ;;  %v193_v13 = vpop.xlane.xlu2 %192 }
  0xc5   :  { %v1930_v38 = vpop.eup %1527  ;;  %3064 = vst [vmem:[#allocation36_spill] sm:$0xff] %v1949_v17  ;;  %v1995_v55 = vmax.f32 %v1962_v60, 1e-06  ;;  %v2015_v19 = vadd.f32 %v1860_v40, %v326_v20  ;;  %vm313_vm0 = vweird.f32 %v1838_v28  ;;  %v2024_v34 = vor.u32 1.1754944e-38, %v319_v57 }
  0xc6   :  { %3060 = vst [vmem:[#allocation34_spill] sm:$0xff] %v1930_v38  ;;  %v1964_v27 = vpop.eup %1529  ;;  %v369_v39 = vmul.f32 %v1930_v38, %v1850_v35  ;;  %1539 = vrcp.f32 %v1988_v56  ;;  %v311_v62 = vmul.f32 %v1915_v33, %v310_v25  ;;  %vm314_vm4 = vweird.f32 %v1915_v33  ;;  %v189_v17 = vpop.xlane.xlu0 %188 }
  0xc7   :  { %3065 = vst [vmem:[#allocation37_spill] sm:$0xff] %v1959_v10  ;;  %v1990_v8 = vpop.eup %1531  ;;  %v577_v10 = vsub.f32 128.0, %v1868_v44  ;;  %1541 = vrcp.f32 %v1995_v55  ;;  %vm373_vm5 = vweird.f32 %v1850_v35  ;;  %v575_v51 = vsub.f32 128.0, %v1905_v21  ;;  %vm2105_vm8 = vmor %vm313_vm0, %vm314_vm4 }
  0xc8   :  { %3068 = vst [vmem:[#allocation38_spill] sm:$0xff] %v1975_v58  ;;  %v2004_v14 = vpop.eup %1533  ;;  %v370_v43 = vsub.f32 1.0, %v369_v39  ;;  %v384_v20 = vmul.f32 %v1990_v8, %v1900_v15  ;;  %v3075_v39 = vmov 0  ;;  %v3079_v58 = vmov 0 }
  0xc9   :  { %3069 = vst [vmem:[#allocation39_spill] sm:$0xff] %v1990_v8  ;;  %v2029_v7 = vpop.eup %1535  ;;  %v3076_v39 = vsel %vm2035_vm1, 4294967295, %v3075_v39  ;;  %v2041_v42 = vmax.f32 %v577_v10, 1e-06  ;;  %v3080_v58 = vsel %vm2048_vm2, 4294967295, %v3079_v58  ;;  %v2058_v10 = vor.u32 1.1754944e-38, %v379_v4 }
  0xca   :  { %3070 = vst [vmem:[#allocation40_spill] sm:$0xff] %v1999_v24  ;;  %1543 = vrcp.f32 %v2002_v54  ;;  %v371_v57 = vmul.f32 %v1930_v38, %v370_v43  ;;  %v2067_v2 = vmax.f32 %v193_v13, 1e-06  ;;  %v385_v11 = vsub.f32 1.0, %v384_v20 }
  0xcb   :  { %3071 = vst [vmem:[#allocation41_spill] sm:$0xff] %v2002_v54  ;;  %v394_v36 = vand.u32 2147483648, %v1900_v15  ;;  %v354_v4 = vmul.f32 %v2029_v7, %v1928_v49  ;;  %1545 = vrcp.f32 %v2041_v42  ;;  %v364_v43 = vand.u32 2147483648, %v1928_v49 }
  0xcc   :  { %3074 = vst [vmem:[#allocation42_spill] sm:$0xff] %v2015_v19  ;;  %v579_v21 = vsub.f32 128.0, %v1962_v60  ;;  %vm374_vm6 = vweird.f32 %v1930_v38  ;;  %vm388_vm7 = vweird.f32 %v1900_v15  ;;  %v580_v24 = vsub.f32 128.0, %v193_v13  ;;  %v2086_v54 = vpop.xlane.xlu1 %196 }
  0xcd   :  { %3077 = vst [vmem:[#allocation43_spill] sm:$0xff] %v3076_v39  ;;  %v2073_v39 = vpop.eup %1537  ;;  %v2095_v60 = vmax.f32 %v575_v51, 1e-06  ;;  %v424_v52 = vand.u32 2147483648, %v1995_v55  ;;  %1547 = vrcp.f32 %v2067_v2  ;;  %v355_v20 = vsub.f32 1.0, %v354_v4  ;;  %vm2134_vm13 = vmor %vm373_vm5, %vm374_vm6 }
  0xce   :  { %3078 = vst [vmem:[#allocation44_spill] sm:$0xff] %v2041_v42  ;;  %v2081_v25 = vpop.eup %1539  ;;  %v2093_v42 = vadd.f32 %v1930_v38, %v371_v57  ;;  %v386_v57 = vmul.f32 %v1990_v8, %v385_v11  ;;  %v631_v40 = vmul.f32 %v1907_v22, %v1829_v23  ;;  %v2118_v47 = vor.u32 1.1754944e-38, %v364_v43 }
  0xcf   :  { %3081 = vst [vmem:[#allocation45_spill] sm:$0xff] %v3080_v58  ;;  %v2116_v58 = vor.u32 1.1754944e-38, %v394_v36  ;;  %v2120_v45 = vmax.f32 %v579_v21, 1e-06  ;;  %vm389_vm10 = vweird.f32 %v1990_v8  ;;  %vm358_vm11 = vweird.f32 %v1928_v49 }
  0xd0   :  { %3082 = vst [vmem:[#allocation46_spill] sm:$0xff] %v2058_v10  ;;  %v2076_v10 = vadd.f32 %v1915_v33, %v311_v62  ;;  %v616_v62 = vmul.f32 %v1964_v27, %v1872_v46  ;;  %v3093_v36 = vmov 0  ;;  %1549 = vrcp.f32 %v2095_v60  ;;  %vm2170_vm0 = vmor %vm388_vm7, %vm389_vm10 }
  0xd1   :  { %3083 = vst [vmem:[#allocation47_spill] sm:$0xff] %v2073_v39  ;;  %v2090_v39 = vpop.eup %1541  ;;  %v3094_v36 = vsel %vm2134_vm13, 4294967295, %v3093_v36  ;;  %v2139_v43 = vor.u32 1.1754944e-38, %v424_v52  ;;  %v2141_v21 = vmax.f32 %v580_v24, 1e-06  ;;  %v632_v35 = vsub.f32 1.0, %v631_v40 }
  0xd2   :  { %3084 = vst [vmem:[#allocation48_spill] sm:$0xff] %v2093_v42  ;;  %v2099_v19 = vpop.eup %1543  ;;  %v617_v51 = vsub.f32 1.0, %v616_v62  ;;  %v414_v11 = vmul.f32 %v2090_v39, %v1995_v55  ;;  %v439_v62 = vand.u32 2147483648, %v2067_v2  ;;  %vm359_vm14 = vweird.f32 %v2029_v7 }
  0xd3   :  { %3085 = vst [vmem:[#allocation49_spill] sm:$0xff] %v2095_v60  ;;  %v2128_v31 = vpop.eup %1545  ;;  %1551 = vrcp.f32 %v2120_v45  ;;  %v2159_v24 = vmax.f32 %v189_v17, 1e-06  ;;  %v3102_v40 = vmov 0  ;;  %vm621_vm4 = vweird.f32 %v1964_v27  ;;  %vm2219_vm5 = vmor %vm358_vm11, %vm359_vm14 }
  0xd4   :  { %3086 = vst [vmem:[#allocation50_spill] sm:$0xff] %v2099_v19  ;;  %v2143_v19 = vpop.xlane.xlu2 %198  ;;  %v618_v4 = vmul.f32 %v1964_v27, %v617_v51  ;;  %v2154_v60 = vpop.eup %1547  ;;  %v415_v51 = vsub.f32 1.0, %v414_v11  ;;  %v3103_v40 = vsel %vm2170_vm0, 4294967295, %v3102_v40  ;;  %1553 = vrcp.f32 %v2141_v21 }
  0xd5   :  { %3089 = vst [vmem:[#allocation51_spill] sm:$0xff] %v2116_v58  ;;  %v578_v58 = vsub.f32 128.0, %v189_v17  ;;  %v601_v17 = vmul.f32 %v1890_v6, %v1819_v18  ;;  %v203_v52 = vpop.xlane.xlu1 %202  ;;  %1555 = vrcp.f32 %v2159_v24  ;;  %vm620_vm6 = vweird.f32 %v1872_v46 }
  0xd6   :  { %3090 = vst [vmem:[#allocation52_spill] sm:$0xff] %v2118_v47  ;;  %v356_v47 = vmul.f32 %v2029_v7, %v355_v20  ;;  %v619_v20 = vadd.f32 %v1964_v27, %v618_v4  ;;  %v2188_v15 = vpop.eup %1549  ;;  %v429_v4 = vmul.f32 %v2154_v60, %v2067_v2  ;;  %v3105_v11 = vand.u32 2147483647, %v1805_v9  ;;  %vm2209_vm10 = vmor %vm620_vm6, %vm621_vm4 }
  0xd7   :  { %3091 = vst [vmem:[#allocation53_spill] sm:$0xff] %v2120_v45  ;;  %v2194_v45 = vpop.xlane.xlu0 %194  ;;  %v602_v38 = vsub.f32 1.0, %v601_v17  ;;  %vm636_vm11 = vweird.f32 %v1907_v22  ;;  %vm635_vm6 = vweird.f32 %v1829_v23  ;;  %vm3127_vm0 = vweird.f32 %v2090_v39 }
  0xd8   :  { %3092 = vst [vmem:[#allocation54_spill] sm:$0xff] %v2128_v31  ;;  %v2151_v31 = vadd.f32 %v1990_v8, %v386_v57  ;;  %v2164_v57 = vmax.f32 %v2086_v54, 1e-06  ;;  %vm2200_vm7 = vcmp.eq.f32.partialorder %v3105_v11, 8.507059e+37  ;;  %v553_v11 = vsub.f32 %v203_v52, %v1770_v53 }
  0xd9   :  { %3095 = vst [vmem:[#allocation55_spill] sm:$0xff] %v3094_v36  ;;  %v623_v17 = vsel %vm2209_vm10, %v1964_v27, %v619_v20  ;;  %v430_v49 = vsub.f32 1.0, %v429_v4  ;;  %v641_v52 = vand.u32 2147483648, %v1829_v23  ;;  %v3114_v27 = vand.u32 2147483647, %v1793_v3 }
  0xda   :  { %3096 = vst [vmem:[#allocation56_spill] sm:$0xff] %v2139_v43  ;;  %v2161_v43 = vor.u32 1.1754944e-38, %v439_v62  ;;  %v2184_v62 = vadd.f32 %v2029_v7, %v356_v47  ;;  %v624_v47 = vand.u32 2147483647, %v1872_v46  ;;  %1557 = vrcp.f32 %v2164_v57 }
  0xdb   :  { %3097 = vst [vmem:[#allocation57_spill] sm:$0xff] %v2141_v21  ;;  %v633_v21 = vmul.f32 %v1907_v22, %v632_v35  ;;  %v416_v35 = vmul.f32 %v2090_v39, %v415_v51  ;;  %v2224_v51 = vmax.f32 %v578_v58, 1e-06  ;;  %vm2243_vm4 = vcmp.eq.f32.partialorder %v3114_v27, 8.507059e+37 }
  0xdc   :  { %3098 = vst [vmem:[#allocation58_spill] sm:$0xff] %v2151_v31  ;;  %vm625_vm14 = vcmp.eq.f32.partialorder %v624_v47, 8.507059e+37  ;;  %v205_v42 = vpop.xlane.xlu2 %204  ;;  %v603_v8 = vmul.f32 %v1890_v6, %v602_v38  ;;  %v583_v38 = vsub.f32 128.0, %v2143_v19  ;;  %v3138_v20 = vand.u32 2147483647, %v1811_v12  ;;  %v3184_v12 = vld [vmem:[#allocation26_spill] sm:$0xff] }
  0xdd   :  { %3099 = vst [vmem:[#allocation59_spill] sm:$0xff] %v2154_v60  ;;  %v634_v36 = vadd.f32 %v1907_v22, %v633_v21  ;;  %v639_v21 = vand.u32 2147483647, %v1829_v23  ;;  %v2259_v3 = vadd.f32 %v2090_v39, %v416_v35  ;;  %1559 = vrcp.f32 %v2224_v51 }
  0xde   :  { %3100 = vst [vmem:[#allocation60_spill] sm:$0xff] %v2161_v43  ;;  %v626_v43 = vand.u32 2147483648, %v1872_v46  ;;  %v2213_v46 = vpop.eup %1551  ;;  %v554_v35 = vsub.f32 %v205_v42, %v1762_v48  ;;  %v604_v23 = vadd.f32 %v1890_v6, %v603_v8  ;;  %v3149_v8 = vld [vmem:[#allocation11_spill] sm:$0xff]  ;;  %v3185_v44 = vand.u32 2147483647, %v3184_v12 }
  0xdf   :  { %3101 = vst [vmem:[#allocation61_spill] sm:$0xff] %v2164_v57  ;;  %v2237_v58 = vpop.eup %1553  ;;  %v582_v57 = vsub.f32 128.0, %v2086_v54  ;;  %v3117_v54 = vand.u32 2147483647, %v1788_v63  ;;  %v2272_v63 = vmax.f32 %v2143_v19, 1e-06  ;;  %v201_v42 = vpop.xlane.xlu0 %200 }
  0xe0   :  { %3104 = vst [vmem:[#allocation62_spill] sm:$0xff] %v3103_v40  ;;  %v409_v40 = vand.u32 2147483648, %v2159_v24  ;;  %v2250_v4 = vpop.eup %1555  ;;  %v581_v19 = vsub.f32 128.0, %v2194_v45  ;;  %v3190_v12 = vld [vmem:[#allocation23_spill] sm:$0xff] }
  0xe1   :  { %3110 = vst [vmem:[#allocation63_spill] sm:$0xff] %v2213_v46  ;;  %v627_v46 = vor.u32 1.1754944e-38, %v626_v43  ;;  %vm2254_vm10 = vcmp.eq.f32.partialorder %v3117_v54, 8.507059e+37  ;;  %v2285_v54 = vmax.f32 %v2194_v45, 1e-06  ;;  %1561 = vrcp.f32 %v2272_v63 }
  0xe2   :  { %3113 = vst [vmem:[#allocation64_spill] sm:$0xff] %v2237_v58  ;;  %v2261_v27 = vor.u32 1.1754944e-38, %v409_v40  ;;  %v642_v58 = vor.u32 1.1754944e-38, %v641_v52  ;;  %v611_v52 = vand.u32 2147483648, %v1819_v18  ;;  %v3124_v45 = vand.u32 2147483647, %v1838_v28 }
  0xe3   :  { %v628_v43 = vsel %vm625_vm14, %v627_v46, %v623_v17  ;;  %vm2266_vm14 = vmor %vm635_vm6, %vm636_vm11  ;;  %v431_v17 = vmul.f32 %v2154_v60, %v430_v49  ;;  %vm640_vm6 = vcmp.eq.f32.partialorder %v639_v21, 8.507059e+37  ;;  %v661_v28 = vmul.f32 %v2081_v25, %v1988_v56 }
  0xe4   :  { %v629_v46 = vmul.f32 %v628_v43, %v553_v11  ;;  %v638_v40 = vsel %vm2266_vm14, %v1907_v22, %v634_v36  ;;  %v2279_v11 = vpop.eup %1557  ;;  %v2282_v43 = vmax.f32 %v582_v57, 1e-06  ;;  %v3123_v22 = vsel %vm2010_vm15, %v1840_v29, %v1985_v41 }
  0xe5   :  { %v276_v49 = vsel %vm2200_vm7, %v1909_v26, %v3123_v22  ;;  %v643_v57 = vsel %vm640_vm6, %v642_v58, %v638_v40  ;;  %vm2302_vm11 = vcmp.eq.f32.partialorder %v3124_v45, 8.507059e+37  ;;  %vm3128_vm14 = vweird.f32 %v1995_v55  ;;  %v2318_v41 = vpop.eup %1559 }
  0xe6   :  { %3122 = vst [vmem:[#allocation65_spill] sm:$0xff] %v2282_v43  ;;  %v841_v36 = vand.u32 2147483647, %v629_v46  ;;  %vm2310_vm15 = vmor %vm3128_vm14, %vm3127_vm0  ;;  %v644_v31 = vmul.f32 %v643_v57, %v554_v35  ;;  %vm605_vm7 = vweird.f32 %v1819_v18  ;;  %v609_v26 = vand.u32 2147483647, %v1819_v18 }
  0xe7   :  { %v2325_v58 = vadd.f32 %v2154_v60, %v431_v17  ;;  %v2328_v21 = vmax.f32 %v583_v38, 1e-06  ;;  %vm3133_vm0 = vweird.f32 %v1890_v6  ;;  %1563 = vrcp.f32 %v2285_v54  ;;  %v2371_v47 = vpop.eup %1561 }
  0xe8   :  { %vm2332_vm6 = vmor %vm605_vm7, %vm3133_vm0  ;;  %v277_v46 = vmul.f32 %v276_v49, %v1770_v53  ;;  %v552_v35 = vsub.f32 %v201_v42, %v1764_v50  ;;  %v399_v38 = vmul.f32 %v2250_v4, %v2159_v24  ;;  %v857_v17 = vsub.f32 1.0, %v841_v36 }
  0xe9   :  { %3131 = vst [vmem:[#allocation66_spill] sm:$0xff] %v2325_v58  ;;  %v608_v40 = vsel %vm2332_vm6, %v1890_v6, %v604_v23  ;;  %v3136_v22 = vsel %vm1970_vm12, %v1816_v16, %v1933_v1  ;;  %v612_v53 = vor.u32 1.1754944e-38, %v611_v52  ;;  %v842_v49 = vand.u32 2147483647, %v644_v31 }
  0xea   :  { %3132 = vst [vmem:[#allocation67_spill] sm:$0xff] %v2328_v21  ;;  %v291_v57 = vsel %vm2243_vm4, %v1884_v0, %v3136_v22  ;;  %v3137_v6 = vsel %vm1879_vm3, %v1795_v5, %v1855_v37  ;;  %vm610_vm14 = vcmp.eq.f32.partialorder %v609_v26, 8.507059e+37  ;;  %v662_v59 = vsub.f32 1.0, %v661_v28 }
  0xeb   :  { %v261_v23 = vsel %vm2254_vm10, %v1842_v30, %v3137_v6  ;;  %v454_v36 = vand.u32 2147483648, %v2285_v54  ;;  %v3026_v16 = vlaneseq  ;;  %v613_v1 = vsel %vm610_vm14, %v612_v53, %v608_v40  ;;  %v3147_v53 = vld [vmem:[#allocation32_spill] sm:$0xff] }
  0xec   :  { %v676_v0 = vmul.f32 %v2004_v14, %v1913_v32  ;;  %vm2365_vm12 = vcmp.eq.f32.partialorder %v3138_v20, 8.507059e+37  ;;  %1565 = vrcp.f32 %v2282_v43  ;;  %v489_v5 = vadd.f32 1e-06, %v277_v46 }
  0xed   :  { %v292_v30 = vmul.f32 %v291_v57, %v1762_v48  ;;  %v614_v37 = vmul.f32 %v613_v1, %v552_v35  ;;  %vm3141_vm3 = vweird.f32 %v2154_v60  ;;  %vm3142_vm4 = vweird.f32 %v2067_v2  ;;  %v2384_v31 = vpop.eup %1563  ;;  %v3146_v57 = vld [vmem:[#allocation25_spill] sm:$0xff] }
  0xee   :  { %vm2377_vm10 = vmor %vm3142_vm4, %vm3141_vm3  ;;  %1567 = vrcp.f32 %v2328_v21  ;;  %v873_v42 = vadd.f32 1e-06, %v857_v17  ;;  %v262_v45 = vmul.f32 %v261_v23, %v1764_v50  ;;  %v400_v26 = vsub.f32 1.0, %v399_v38 }
  0xef   :  { %v858_v28 = vsub.f32 1.0, %v842_v49  ;;  %v663_v18 = vmul.f32 %v2081_v25, %v662_v59  ;;  %v2391_v46 = vor.u32 1.1754944e-38, %v454_v36  ;;  %v2393_v40 = vmax.f32 %v581_v19, 1e-06  ;;  %v209_v36 = vpop.xlane.xlu1 %208 }
  0xf0   :  { %v3145_v50 = vsel %vm2105_vm8, %v1915_v33, %v2076_v10  ;;  %v677_v17 = vsub.f32 1.0, %v676_v0  ;;  %1569 = vlog2.f32 %v489_v5  ;;  %v490_v22 = vadd.f32 1e-06, %v292_v30 }
  0xf1   :  { %v321_v35 = vsel %vm2302_vm11, %v2024_v34, %v3145_v50  ;;  %v840_v38 = vand.u32 2147483647, %v614_v37  ;;  %v646_v49 = vmul.f32 %v3147_v53, %v3146_v57  ;;  %v444_v19 = vmul.f32 %v2384_v31, %v2285_v54  ;;  %v3155_v50 = vld [vmem:[#allocation42_spill] sm:$0xff] }
  0xf2   :  { %v2408_v6 = vand.u32 127, %v3026_v16  ;;  %1571 = vlog2.f32 %v873_v42  ;;  %v488_v13 = vadd.f32 1e-06, %v262_v45  ;;  %v2410_v33 = vpop.eup %1565  ;;  %v874_v10 = vadd.f32 1e-06, %v858_v28  ;;  %v3157_v16 = vld [vmem:[#allocation36_spill] sm:$0xff] }
  0xf3   :  { %3148 = vst [vmem:[#allocation25_spill] sm:$0xff] %v2410_v33  ;;  %v322_v34 = vmul.f32 %v321_v35, %v3149_v8  ;;  %v664_v23 = vadd.f32 %v2081_v25, %v663_v18  ;;  %vm666_vm8 = vweird.f32 %v2081_v25  ;;  %v669_v1 = vand.u32 2147483647, %v1988_v56  ;;  %v3154_v18 = vld [vmem:[#allocation28_spill] sm:$0xff]  ;;  %v3189_v33 = vld [vmem:[#allocation47_spill] sm:$0xff] }
  0xf4   :  { %v2415_v59 = vpop.eup %1567  ;;  %v671_v0 = vand.u32 2147483648, %v1988_v56  ;;  %v678_v20 = vmul.f32 %v2004_v14, %v677_v17  ;;  %v647_v5 = vsub.f32 1.0, %v646_v49  ;;  %v401_v30 = vmul.f32 %v2250_v4, %v400_v26 }
  0xf5   :  { %3150 = vst [vmem:[#allocation32_spill] sm:$0xff] %v2415_v59  ;;  %1573 = vlog2.f32 %v490_v22  ;;  %v856_v37 = vsub.f32 1.0, %v840_v38  ;;  %vm665_vm11 = vweird.f32 %v1988_v56  ;;  %v445_v42 = vsub.f32 1.0, %v444_v19 }
  0xf6   :  { %1575 = vlog2.f32 %v488_v13  ;;  %vm2422_vm7 = vmor %vm665_vm11, %vm666_vm8  ;;  %v3156_v35 = vsel %vm2048_vm2, %v3154_v18, %v3155_v50  ;;  %v648_v26 = vmul.f32 %v3147_v53, %v647_v5  ;;  %v1570_v22 = vpop.eup %1569  ;;  %v492_v56 = vadd.f32 1e-06, %v322_v34 }
  0xf7   :  { %v336_v17 = vsel %vm2365_vm12, %v3157_v16, %v3156_v35  ;;  %1577 = vlog2.f32 %v874_v10  ;;  %v556_v38 = vsub.f32 %v209_v36, %v3149_v8  ;;  %v668_v49 = vsel %vm2422_vm7, %v2081_v25, %v664_v23  ;;  %v211_v8 = vpop.xlane.xlu2 %210  ;;  %v207_v35 = vpop.xlane.xlu0 %206 }
  0xf8   :  { %v1572_v19 = vpop.eup %1571  ;;  %vm670_vm0 = vcmp.eq.f32.partialorder %v669_v1, 8.507059e+37  ;;  %v672_v13 = vor.u32 1.1754944e-38, %v671_v0  ;;  %v679_v28 = vadd.f32 %v2004_v14, %v678_v20  ;;  %vm681_vm2 = vweird.f32 %v2004_v14  ;;  %v3159_v1 = vld [vmem:[#allocation22_spill] sm:$0xff] }
  0xf9   :  { %vm404_vm6 = vweird.f32 %v2250_v4  ;;  %v872_v16 = vadd.f32 1e-06, %v856_v37  ;;  %v337_v5 = vmul.f32 %v336_v17, %v3158_v61  ;;  %vm680_vm14 = vweird.f32 %v1913_v32 }
  0xfa   :  { %v686_v10 = vand.u32 2147483648, %v1913_v32  ;;  %v673_v34 = vsel %vm670_vm0, %v672_v13, %v668_v49  ;;  %v684_v25 = vand.u32 2147483647, %v1913_v32  ;;  %v649_v23 = vadd.f32 %v3147_v53, %v648_v26  ;;  %vm2458_vm8 = vmor %vm680_vm14, %vm681_vm2 }
  0xfb   :  { %vm651_vm12 = vweird.f32 %v3147_v53  ;;  %v1574_v36 = vpop.eup %1573  ;;  %v3160_v0 = vand.u32 2147483647, %v3159_v1  ;;  %vm403_vm4 = vweird.f32 %v2159_v24  ;;  %v446_v37 = vmul.f32 %v2384_v31, %v445_v42 }
  0xfc   :  { %v507_v45 = vmul.f32 0.6931472, %v1570_v22  ;;  %v674_v18 = vmul.f32 %v673_v34, %v556_v38  ;;  %v656_v50 = vand.u32 2147483648, %v3146_v57  ;;  %v1576_v17 = vpop.eup %1575  ;;  %v683_v26 = vsel %vm2458_vm8, %v2004_v14, %v679_v28 }
  0xfd   :  { %vm2450_vm3 = vcmp.eq.f32.partialorder %v3160_v0, 8.507059e+37  ;;  %v557_v49 = vsub.f32 %v211_v8, %v3158_v61  ;;  %vm650_vm11 = vweird.f32 %v3146_v57  ;;  %v654_v42 = vand.u32 2147483647, %v3146_v57  ;;  %v1578_v22 = vpop.eup %1577  ;;  %v3167_v57 = vld [vmem:[#allocation12_spill] sm:$0xff]  ;;  %v3168_v0 = vld [vmem:[#allocation49_spill] sm:$0xff] }
  0xfe   :  { %v891_v38 = vmul.f32 0.6931472, %v1572_v19  ;;  %1579 = vlog2.f32 %v492_v56  ;;  %v493_v13 = vadd.f32 1e-06, %v337_v5  ;;  %v687_v34 = vor.u32 1.1754944e-38, %v686_v10  ;;  %vm2471_vm7 = vmor %vm650_vm11, %vm651_vm12 }
  0xff   :  { %vm448_vm0 = vweird.f32 %v2285_v54  ;;  %1581 = vlog2.f32 %v872_v16  ;;  %vm685_vm2 = vcmp.eq.f32.partialorder %v684_v25, 8.507059e+37  ;;  %v653_v14 = vsel %vm2471_vm7, %v3147_v53, %v649_v23  ;;  %vm2500_vm11 = vmor %vm403_vm4, %vm404_vm6 }
 0x100   :  { %v555_v28 = vsub.f32 %v207_v35, %v3167_v57  ;;  %v537_v19 = vsub.f32 0.0, %v507_v45  ;;  %v844_v56 = vand.u32 2147483647, %v674_v18  ;;  %v688_v61 = vsel %vm685_vm2, %v687_v34, %v683_v26  ;;  %v3177_v34 = vld [vmem:[#allocation31_spill] sm:$0xff] }
 0x101   :  { %v657_v5 = vor.u32 1.1754944e-38, %v656_v50  ;;  %v509_v10 = vmul.f32 0.6931472, %v1574_v36  ;;  %v689_v8 = vmul.f32 %v688_v61, %v557_v49  ;;  %vm655_vm14 = vcmp.eq.f32.partialorder %v654_v42, 8.507059e+37  ;;  %v3169_v49 = vld [vmem:[#allocation33_spill] sm:$0xff] }
 0x102   :  { %v706_v32 = vmul.f32 %v2188_v15, %v3168_v0  ;;  %v2483_v48 = vadd.f32 %v2250_v4, %v401_v30  ;;  %1583 = vrcp.f32 %v2393_v40  ;;  %v505_v16 = vmul.f32 0.6931472, %v1576_v17  ;;  %v3245_v17 = vld [vmem:[#allocation56_spill] sm:$0xff] }
 0x103   :  { %v658_v25 = vsel %vm655_vm14, %v657_v5, %v653_v14  ;;  %v921_v53 = vsub.f32 0.0, %v891_v38  ;;  %v893_v23 = vmul.f32 0.6931472, %v1578_v22  ;;  %1585 = vlog2.f32 %v493_v13  ;;  %v3176_v13 = vld [vmem:[#allocation24_spill] sm:$0xff]  ;;  %v3179_v14 = vld [vmem:[#allocation29_spill] sm:$0xff] }
 0x104   :  { %v659_v45 = vmul.f32 %v658_v25, %v555_v28  ;;  %v1580_v18 = vpop.eup %1579  ;;  %v2487_v50 = vadd.f32 %v2384_v31, %v446_v37  ;;  %vm449_vm12 = vweird.f32 %v2384_v31  ;;  %v937_v36 = vmul.f32 0.1, %v537_v19 }
 0x105   :  { %v860_v35 = vsub.f32 1.0, %v844_v56  ;;  %v1582_v26 = vpop.eup %1581  ;;  %v3170_v30 = vand.u32 2147483647, %v3169_v49  ;;  %v538_v37 = vsub.f32 0.0, %v509_v10  ;;  %v845_v22 = vand.u32 2147483647, %v689_v8 }
 0x106   :  { %v3178_v1 = vsel %vm1943_vm9, %v3176_v13, %v3177_v34  ;;  %v707_v19 = vsub.f32 1.0, %v706_v32  ;;  %v2517_v61 = vadd.s32 4294967288, %v2408_v6  ;;  %v536_v5 = vsub.f32 0.0, %v505_v16  ;;  %v3180_v10 = vld [vmem:[#allocation41_spill] sm:$0xff]  ;;  %v3181_v8 = vld [vmem:[#allocation50_spill] sm:$0xff]  ;;  %vm2529_vm9 = vmor %vm448_vm0, %vm449_vm12 }
 0x107   :  { %vm2492_vm8 = vcmp.eq.f32.partialorder %v3170_v30, 8.507059e+37  ;;  %v306_v28 = vsel %vm2450_vm3, %v3179_v14, %v3178_v1  ;;  %v721_v25 = vmul.f32 %v3181_v8, %v3180_v10  ;;  %v2521_v49 = vadd.f32 %v937_v36, %v921_v53 }
 0x108   :  { %v922_v30 = vsub.f32 0.0, %v893_v23  ;;  %v513_v38 = vmul.f32 0.6931472, %v1580_v18  ;;  %v843_v13 = vand.u32 2147483647, %v659_v45  ;;  %v2523_v20 = vpop.eup %1583  ;;  %v2534_v16 = vadd.s32 4294967280, %v2408_v6 }
 0x109   :  { %v889_v34 = vmul.f32 0.6931472, %v1582_v26  ;;  %v876_v1 = vadd.f32 1e-06, %v860_v35  ;;  %v307_v53 = vmul.f32 %v306_v28, %v3167_v57  ;;  %v1586_v23 = vpop.eup %1585  ;;  %v938_v18 = vmul.f32 0.1, %v538_v37 }
 0x10a   :  { %v861_v36 = vsub.f32 1.0, %v845_v22  ;;  %v708_v14 = vmul.f32 %v2188_v15, %v707_v19  ;;  %vm2544_vm6 = vcmp.eq.f32.partialorder %v3185_v44, 8.507059e+37  ;;  %v936_v26 = vmul.f32 0.1, %v536_v5  ;;  %v3188_v28 = vld [vmem:[#allocation38_spill] sm:$0xff] }
 0x10b   :  { %v2549_v35 = vadd.s32 4294967264, %v2408_v6  ;;  %v722_v57 = vsub.f32 1.0, %v721_v25  ;;  %v691_v43 = vmul.f32 %v3189_v33, %v3188_v28  ;;  %v1416_v37 = vperm.slane %v2521_v49, %v2517_v61 }
 0x10c   :  { %v2555_v22 = vadd.f32 %v938_v18, %v922_v30  ;;  %v540_v19 = vsub.f32 0.0, %v513_v38  ;;  %v859_v45 = vsub.f32 1.0, %v843_v13  ;;  %v3191_v44 = vand.u32 2147483647, %v3190_v12  ;;  %v215_v18 = vpop.xlane.xlu1 %214  ;;  %v3195_v13 = vld [vmem:[#allocation52_spill] sm:$0xff] }
 0x10d   :  { %v920_v5 = vsub.f32 0.0, %v889_v34  ;;  %1587 = vlog2.f32 %v876_v1  ;;  %v2563_v21 = vmul.f32 0.6931472, %v1586_v23  ;;  %v491_v25 = vadd.f32 1e-06, %v307_v53 }
 0x10e   :  { %vm2559_vm3 = vcmp.eq.f32.partialorder %v3191_v44, 8.507059e+37  ;;  %v877_v58 = vadd.f32 1e-06, %v861_v36  ;;  %v709_v60 = vadd.f32 %v2188_v15, %v708_v14  ;;  %vm711_vm4 = vweird.f32 %v2188_v15 }
 0x10f   :  { %v692_v30 = vsub.f32 1.0, %v691_v43  ;;  %v3194_v38 = vsel %vm2219_vm5, %v2029_v7, %v2184_v62  ;;  %v714_v1 = vand.u32 2147483647, %v3168_v0  ;;  %v716_v53 = vand.u32 2147483648, %v3168_v0 }
 0x110   :  { %v366_v34 = vsel %vm2492_vm8, %v3195_v13, %v3194_v38  ;;  %v723_v23 = vmul.f32 %v3181_v8, %v722_v57  ;;  %v2580_v43 = vmul.f32 0.1, %v540_v19  ;;  %v875_v14 = vadd.f32 1e-06, %v859_v45  ;;  %v3198_v57 = vld [vmem:[#allocation14_spill] sm:$0xff] }
 0x111   :  { %vm710_vm7 = vweird.f32 %v3168_v0  ;;  %v2583_v9 = vadd.f32 %v936_v26, %v920_v5  ;;  %1589 = vlog2.f32 %v491_v25  ;;  %v693_v42 = vmul.f32 %v3189_v33, %v692_v30  ;;  %v217_v5 = vpop.xlane.xlu2 %216  ;;  %v3201_v30 = vld [vmem:[#allocation48_spill] sm:$0xff] }
 0x112   :  { %vm2586_vm5 = vmor %vm710_vm7, %vm711_vm4  ;;  %1591 = vlog2.f32 %v877_v58  ;;  %v367_v12 = vmul.f32 %v366_v34, %v3198_v57  ;;  %v559_v19 = vsub.f32 %v215_v18, %v3198_v57  ;;  %vm1417_vm0 = vcmask 130112   ;;  %v3200_v58 = vld [vmem:[#allocation34_spill] sm:$0xff]  ;;  %v3208_v57 = vld [vmem:[#allocation27_spill] sm:$0xff] }
 0x113   :  { %v713_v0 = vsel %vm2586_vm5, %v2188_v15, %v709_v60  ;;  %v1588_v45 = vpop.eup %1587  ;;  %vm715_vm2 = vcmp.eq.f32.partialorder %v714_v1, 8.507059e+37  ;;  %v717_v26 = vor.u32 1.1754944e-38, %v716_v53  ;;  %v724_v44 = vadd.f32 %v3181_v8, %v723_v23  ;;  %v3203_v18 = vld [vmem:[#allocation46_spill] sm:$0xff]  ;;  %v3209_v25 = vld [vmem:[#allocation40_spill] sm:$0xff] }
 0x114   :  { %vm726_vm14 = vweird.f32 %v3181_v8  ;;  %1593 = vlog2.f32 %v875_v14  ;;  %v3202_v38 = vsel %vm2134_vm13, %v3200_v58, %v3201_v30  ;;  %vm725_vm12 = vweird.f32 %v3180_v10  ;;  %v3206_v14 = vld [vmem:[#allocation15_spill] sm:$0xff]  ;;  %v3211_v30 = vld [vmem:[#allocation37_spill] sm:$0xff] }
 0x115   :  { %v381_v13 = vsel %vm2544_vm6, %v3203_v18, %v3202_v38  ;;  %v731_v15 = vand.u32 2147483648, %v3180_v10  ;;  %v718_v60 = vsel %vm715_vm2, %v717_v26, %v713_v0  ;;  %v729_v34 = vand.u32 2147483647, %v3180_v10  ;;  %vm2611_vm4 = vmor %vm725_vm12, %vm726_vm14  ;;  %v213_v0 = vpop.xlane.xlu0 %212 }
 0x116   :  { %v694_v1 = vadd.f32 %v3189_v33, %v693_v42  ;;  %vm696_vm8 = vweird.f32 %v3189_v33  ;;  %v719_v53 = vmul.f32 %v718_v60, %v559_v19  ;;  %v560_v62 = vsub.f32 %v217_v5, %v3206_v14 }
 0x117   :  { %v3210_v58 = vsel %vm2035_vm1, %v3208_v57, %v3209_v25  ;;  %v701_v42 = vand.u32 2147483648, %v3188_v28  ;;  %v1590_v26 = vpop.eup %1589  ;;  %v728_v19 = vsel %vm2611_vm4, %v3181_v8, %v724_v44  ;;  %vm695_vm13 = vweird.f32 %v3188_v28  ;;  %v3214_v44 = vld [vmem:[#allocation16_spill] sm:$0xff] }
 0x118   :  { %v351_v10 = vsel %vm2559_vm3, %v3211_v30, %v3210_v58  ;;  %v699_v5 = vand.u32 2147483647, %v3188_v28  ;;  %v751_v38 = vmul.f32 %v2318_v41, %v2224_v51  ;;  %v1592_v18 = vpop.eup %1591  ;;  %v1414_v59 = vperm.slane %v2583_v9, %v2408_v6  ;;  %vm2636_vm1 = vmor %vm695_vm13, %vm696_vm8 }
 0x119   :  { %v897_v60 = vmul.f32 0.6931472, %v1588_v45  ;;  %v495_v56 = vadd.f32 1e-06, %v367_v12  ;;  %v732_v57 = vor.u32 1.1754944e-38, %v731_v15  ;;  %v382_v8 = vmul.f32 %v381_v13, %v3206_v14  ;;  %v3218_v14 = vld [vmem:[#allocation53_spill] sm:$0xff] }
 0x11a   :  { %vm730_vm6 = vcmp.eq.f32.partialorder %v729_v34, 8.507059e+37  ;;  %v698_v28 = vsel %vm2636_vm1, %v3189_v33, %v694_v1  ;;  %v558_v23 = vsub.f32 %v213_v0, %v3214_v44  ;;  %v1594_v58 = vpop.eup %1593  ;;  %v847_v9 = vand.u32 2147483647, %v719_v53  ;;  %v3219_v0 = vld [vmem:[#allocation63_spill] sm:$0xff] }
 0x11b   :  { %v733_v45 = vsel %vm730_vm6, %v732_v57, %v728_v19  ;;  %v352_v12 = vmul.f32 %v351_v10, %v3214_v44  ;;  %v702_v15 = vor.u32 1.1754944e-38, %v701_v42  ;;  %vm1421_vm3 = vcmask 195712  }
 0x11c   :  { %v734_v30 = vmul.f32 %v733_v45, %v560_v62  ;;  %vm700_vm7 = vcmp.eq.f32.partialorder %v699_v5, 8.507059e+37  ;;  %v752_v36 = vsub.f32 1.0, %v751_v38  ;;  %v3215_v7 = vand.u32 2147483647, %v2159_v24  ;;  %v3226_v45 = vld [vmem:[#allocation44_spill] sm:$0xff] }
 0x11d   :  { %v924_v34 = vsub.f32 0.0, %v897_v60  ;;  %v511_v33 = vmul.f32 0.6931472, %v1590_v26  ;;  %v703_v1 = vsel %vm700_vm7, %v702_v15, %v698_v28  ;;  %v766_v53 = vmul.f32 %v3219_v0, %v3218_v14 }
 0x11e   :  { %vm2648_vm5 = vcmp.eq.f32.partialorder %v3215_v7, 8.507059e+37  ;;  %v899_v19 = vmul.f32 0.6931472, %v1592_v18  ;;  %1595 = vlog2.f32 %v495_v56  ;;  %v496_v10 = vadd.f32 1e-06, %v382_v8 }
 0x11f   :  { %v704_v42 = vmul.f32 %v703_v1, %v558_v23  ;;  %v1418_v62 = vsel %vm1417_vm0, %v1416_v37, %v1414_v59  ;;  %v895_v24 = vmul.f32 0.6931472, %v1594_v58  ;;  %v863_v7 = vsub.f32 1.0, %v847_v9 }
 0x120   :  { %v494_v5 = vadd.f32 1e-06, %v352_v12  ;;  %v3220_v38 = vsub.f32 0.0, %v2563_v21  ;;  %v2661_v26 = vadd.s32 4294967256, %v2408_v6  ;;  %v848_v57 = vand.u32 2147483647, %v734_v30 }
 0x121   :  { %v753_v18 = vmul.f32 %v2318_v41, %v752_v36  ;;  %v2665_v56 = vadd.f32 %v2580_v43, %v924_v34  ;;  %v539_v25 = vsub.f32 0.0, %v511_v33  ;;  %v2668_v61 = vadd.s32 4294967272, %v2408_v6  ;;  %v3222_v36 = vld [vmem:[#allocation30_spill] sm:$0xff] }
 0x122   :  { %v941_v60 = vmul.f32 0.1, %v3220_v38  ;;  %v767_v49 = vsub.f32 1.0, %v766_v53  ;;  %v3221_v37 = vperm.slane %v2555_v22, %v2534_v16  ;;  %v2677_v59 = vadd.s32 4294967240, %v2408_v6  ;;  %v3227_v12 = vld [vmem:[#allocation54_spill] sm:$0xff]  ;;  %v221_v53 = vpop.xlane.xlu1 %220 }
 0x123   :  { %1597 = vlog2.f32 %v496_v10  ;;  %v846_v8 = vand.u32 2147483647, %v704_v42  ;;  %v3223_v28 = vand.u32 2147483647, %v3222_v36  ;;  %v925_v44 = vsub.f32 0.0, %v899_v19 }
 0x124   :  { %v2674_v21 = vsel %vm1421_vm3, %v3221_v37, %v1418_v62  ;;  %v923_v23 = vsub.f32 0.0, %v895_v24  ;;  %v879_v58 = vadd.f32 1e-06, %v863_v7  ;;  %1599 = vlog2.f32 %v494_v5  ;;  %v1596_v9 = vpop.eup %1595 }
 0x125   :  { %vm2681_vm0 = vcmp.eq.f32.partialorder %v3223_v28, 8.507059e+37  ;;  %v864_v16 = vsub.f32 1.0, %v848_v57  ;;  %v754_v22 = vadd.f32 %v2318_v41, %v753_v18  ;;  %vm756_vm2 = vweird.f32 %v2318_v41  ;;  %v223_v28 = vpop.xlane.xlu2 %222 }
 0x126   :  { %v736_v15 = vmul.f32 %v3227_v12, %v3226_v45  ;;  %v3228_v30 = vand.u32 2147483647, %v1995_v55  ;;  %v1428_v33 = vperm.slane %v2665_v56, %v2549_v35  ;;  %v939_v1 = vmul.f32 0.1, %v539_v25  ;;  %v3253_v56 = vld [vmem:[#allocation57_spill] sm:$0xff] }
 0x127   :  { %v761_v19 = vand.u32 2147483648, %v2224_v51  ;;  %v768_v10 = vmul.f32 %v3219_v0, %v767_v49  ;;  %v862_v42 = vsub.f32 1.0, %v846_v8  ;;  %v3231_v62 = vsel %vm2500_vm11, %v2250_v4, %v2483_v48 }
 0x128   :  { %vm2691_vm14 = vcmp.eq.f32.partialorder %v3228_v30, 8.507059e+37  ;;  %v411_v55 = vsel %vm2648_vm5, %v2261_v27, %v3231_v62  ;;  %vm755_vm12 = vweird.f32 %v2224_v51  ;;  %v759_v24 = vand.u32 2147483647, %v2224_v51  ;;  %v3234_v27 = vld [vmem:[#allocation17_spill] sm:$0xff]  ;;  %v3240_v30 = vld [vmem:[#allocation58_spill] sm:$0xff] }
 0x129   :  { %v2709_v7 = vadd.f32 %v941_v60, %v925_v44  ;;  %v2711_v5 = vmul.f32 0.6931472, %v1596_v9  ;;  %1601 = vlog2.f32 %v879_v58  ;;  %vm2715_vm8 = vmor %vm755_vm12, %vm756_vm2  ;;  %v737_v4 = vsub.f32 1.0, %v736_v15  ;;  %v1598_v48 = vpop.eup %1597  ;;  %v3239_v15 = vld [vmem:[#allocation39_spill] sm:$0xff]  ;;  %v3243_v62 = vld [vmem:[#allocation18_spill] sm:$0xff] }
 0x12a   :  { %v955_v38 = vadd.f32 %v939_v1, %v923_v23  ;;  %v880_v13 = vadd.f32 1e-06, %v864_v16  ;;  %v562_v57 = vsub.f32 %v221_v53, %v3234_v27  ;;  %v758_v51 = vsel %vm2715_vm8, %v2318_v41, %v754_v22  ;;  %v1600_v60 = vpop.eup %1599  ;;  %v3237_v22 = vld [vmem:[#allocation62_spill] sm:$0xff]  ;;  %v3242_v53 = vld [vmem:[#allocation51_spill] sm:$0xff] }
 0x12b   :  { %vm1425_vm11 = vcmask 261312   ;;  %v412_v18 = vmul.f32 %v411_v55, %v3234_v27  ;;  %v762_v25 = vor.u32 1.1754944e-38, %v761_v19  ;;  %v769_v49 = vadd.f32 %v3219_v0, %v768_v10 }
 0x12c   :  { %vm771_vm4 = vweird.f32 %v3219_v0  ;;  %v878_v37 = vadd.f32 1e-06, %v862_v42  ;;  %vm760_vm13 = vcmp.eq.f32.partialorder %v759_v24, 8.507059e+37  ;;  %v774_v8 = vand.u32 2147483647, %v3218_v14 }
 0x12d   :  { %v776_v36 = vand.u32 2147483648, %v3218_v14  ;;  %v2728_v44 = vmul.f32 0.6931472, %v1598_v48  ;;  %v763_v23 = vsel %vm760_vm13, %v762_v25, %v758_v51  ;;  %vm770_vm1 = vweird.f32 %v3218_v14  ;;  %v3246_v48 = vld [vmem:[#allocation19_spill] sm:$0xff] }
 0x12e   :  { %v738_v41 = vmul.f32 %v3227_v12, %v737_v4  ;;  %v1424_v58 = vperm.slane %v955_v38, %v2668_v61  ;;  %1603 = vlog2.f32 %v880_v13  ;;  %v764_v9 = vmul.f32 %v763_v23, %v562_v57  ;;  %vm2733_vm6 = vmor %vm770_vm1, %vm771_vm4 }
 0x12f   :  { %vm3238_vm3 = vnez %v3237_v22  ;;  %v1602_v14 = vpop.eup %1601  ;;  %vm1429_vm7 = vcmask 326912   ;;  %v517_v10 = vmul.f32 0.6931472, %v1600_v60  ;;  %v498_v42 = vadd.f32 1e-06, %v412_v18 }
 0x130   :  { %v3241_v1 = vsel %vm3238_vm3, %v3239_v15, %v3240_v30  ;;  %v773_v61 = vsel %vm2733_vm6, %v3219_v0, %v769_v49  ;;  %v563_v55 = vsub.f32 %v223_v28, %v3243_v62  ;;  %1605 = vlog2.f32 %v878_v37 }
 0x131   :  { %v396_v19 = vsel %vm2681_vm0, %v3242_v53, %v3241_v1  ;;  %v3244_v24 = vsel %vm2310_vm15, %v2090_v39, %v2259_v3  ;;  %vm775_vm5 = vcmp.eq.f32.partialorder %v774_v8, 8.507059e+37  ;;  %v777_v4 = vor.u32 1.1754944e-38, %v776_v36  ;;  %v219_v3 = vpop.xlane.xlu0 %218 }
 0x132   :  { %v426_v43 = vsel %vm2691_vm14, %v3245_v17, %v3244_v24  ;;  %v397_v38 = vmul.f32 %v396_v19, %v3246_v48  ;;  %v739_v13 = vadd.f32 %v3227_v12, %v738_v41  ;;  %vm741_vm0 = vweird.f32 %v3227_v12 }
 0x133   :  { %v796_v0 = vmul.f32 %v2523_v20, %v2393_v40  ;;  %v903_v27 = vmul.f32 0.6931472, %v1602_v14  ;;  %v850_v29 = vand.u32 2147483647, %v764_v9  ;;  %v778_v57 = vsel %vm775_vm5, %v777_v4, %v773_v61 }
 0x134   :  { %v746_v39 = vand.u32 2147483648, %v3226_v45  ;;  %1607 = vlog2.f32 %v498_v42  ;;  %v779_v34 = vmul.f32 %v778_v57, %v563_v55  ;;  %vm740_vm15 = vweird.f32 %v3226_v45  ;;  %v1604_v60 = vpop.eup %1603 }
 0x135   :  { %v744_v51 = vand.u32 2147483647, %v3226_v45  ;;  %v1432_v18 = vperm.slane %v2709_v7, %v2661_v26  ;;  %v543_v25 = vsub.f32 0.0, %v2711_v5  ;;  %v2769_v49 = vadd.s32 4294967232, %v2408_v6  ;;  %vm2774_vm2 = vmor %vm740_vm15, %vm741_vm0 }
 0x136   :  { %v427_v37 = vmul.f32 %v426_v43, %v3243_v62  ;;  %v3249_v36 = vand.u32 2147483647, %v2285_v54  ;;  %v497_v28 = vadd.f32 1e-06, %v397_v38  ;;  %v743_v5 = vsel %vm2774_vm2, %v3227_v12, %v739_v13  ;;  %v1606_v9 = vpop.eup %1605 }
 0x137   :  { %v561_v23 = vsub.f32 %v219_v3, %v3246_v48  ;;  %v797_v41 = vsub.f32 1.0, %v796_v0  ;;  %v1426_v16 = vsel %vm1425_vm11, %v1424_v58, %v2674_v21  ;;  %v544_v22 = vsub.f32 0.0, %v2728_v44  ;;  %v3252_v48 = vld [vmem:[#allocation61_spill] sm:$0xff] }
 0x138   :  { %vm2780_vm14 = vcmp.eq.f32.partialorder %v3249_v36, 8.507059e+37  ;;  %v866_v15 = vsub.f32 1.0, %v850_v29  ;;  %v747_v54 = vor.u32 1.1754944e-38, %v746_v39  ;;  %v927_v30 = vsub.f32 0.0, %v903_v27 }
 0x139   :  { %v542_v1 = vsub.f32 0.0, %v517_v10  ;;  %v851_v53 = vand.u32 2147483647, %v779_v34  ;;  %vm745_vm12 = vcmp.eq.f32.partialorder %v744_v51, 8.507059e+37  ;;  %v943_v19 = vmul.f32 0.1, %v543_v25  ;;  %v227_v34 = vpop.xlane.xlu1 %226  ;;  %v225_v45 = vpop.xlane.xlu0 %224 }
 0x13a   :  { %v2792_v14 = vadd.s32 4294967248, %v2408_v6  ;;  %v499_v12 = vadd.f32 1e-06, %v427_v37  ;;  %v748_v42 = vsel %vm745_vm12, %v747_v54, %v743_v5  ;;  %v1608_v61 = vpop.eup %1607  ;;  %v2794_v62 = vmul.f32 0.6931472, %v1606_v9  ;;  %v2861_v54 = vpop.xlane.xlu2 %164 }
 0x13b   :  { %1609 = vlog2.f32 %v497_v28  ;;  %v749_v55 = vmul.f32 %v748_v42, %v561_v23  ;;  %v798_v21 = vmul.f32 %v2523_v20, %v797_v41  ;;  %v2801_v44 = vsel %vm1429_vm7, %v1428_v33, %v1426_v16  ;;  %v3254_v33 = vld [vmem:[#allocation64_spill] sm:$0xff] }
 0x13c   :  { %v2803_v58 = vmul.f32 0.1, %v544_v22  ;;  %v2806_v10 = vadd.s32 4294967216, %v2408_v6  ;;  %v882_v24 = vadd.f32 1e-06, %v866_v15  ;;  %v2808_v17 = vadd.f32 %v943_v19, %v927_v30  ;;  %v3261_v23 = vld [vmem:[#allocation20_spill] sm:$0xff] }
 0x13d   :  { %v2810_v43 = vmul.f32 0.1, %v542_v1  ;;  %v867_v4 = vsub.f32 1.0, %v851_v53  ;;  %v459_v38 = vmul.f32 %v2279_v11, %v3252_v48  ;;  %v2814_v13 = vmul.f32 0.6931472, %v1604_v60  ;;  %v3262_v53 = vld [vmem:[#allocation21_spill] sm:$0xff] }
 0x13e   :  { %v2816_v35 = vmul.f32 0.6931472, %v1608_v61  ;;  %1611 = vlog2.f32 %v499_v12  ;;  %v781_v0 = vmul.f32 %v3254_v33, %v3253_v56  ;;  %v3255_v27 = vand.u32 2147483647, %v2067_v2 }
 0x13f   :  { %v926_v57 = vsub.f32 0.0, %v2794_v62  ;;  %v849_v39 = vand.u32 2147483647, %v749_v55  ;;  %v799_v3 = vadd.f32 %v2523_v20, %v798_v21  ;;  %vm801_vm11 = vweird.f32 %v2523_v20 }
 0x140   :  { %vm2822_vm8 = vcmp.eq.f32.partialorder %v3255_v27, 8.507059e+37  ;;  %1613 = vlog2.f32 %v882_v24  ;;  %v3258_v51 = vsel %vm2529_vm9, %v2384_v31, %v2487_v50  ;;  %v806_v60 = vand.u32 2147483648, %v2393_v40 }
 0x141   :  { %v456_v2 = vsel %vm2780_vm14, %v2391_v46, %v3258_v51  ;;  %v782_v25 = vsub.f32 1.0, %v781_v0  ;;  %v1610_v37 = vpop.eup %1609  ;;  %v2838_v8 = vadd.f32 1e-06, %v867_v4  ;;  %vm800_vm4 = vweird.f32 %v2393_v40  ;;  %v3264_v0 = vld [vmem:[#allocation66_spill] sm:$0xff] }
 0x142   :  { %v804_v36 = vand.u32 2147483647, %v2393_v40  ;;  %v460_v28 = vsub.f32 1.0, %v459_v38  ;;  %vm2842_vm13 = vmor %vm800_vm4, %vm801_vm11  ;;  %vm786_vm9 = vweird.f32 %v3254_v33  ;;  %v789_v46 = vand.u32 2147483647, %v3253_v56 }
 0x143   :  { %v783_v31 = vmul.f32 %v3254_v33, %v782_v25  ;;  %v791_v50 = vand.u32 2147483648, %v3253_v56  ;;  %v865_v5 = vsub.f32 1.0, %v849_v39  ;;  %v2851_v41 = vmul.f32 %v456_v2, %v3261_v23  ;;  %v3266_v39 = vld [vmem:[#allocation60_spill] sm:$0xff]  ;;  %v3267_v2 = vld [vmem:[#allocation67_spill] sm:$0xff] }
 0x144   :  { %v565_v40 = vsub.f32 %v227_v34, %v3261_v23  ;;  %v803_v9 = vsel %vm2842_vm13, %v2523_v20, %v799_v3  ;;  %v2857_v16 = vpop.eup %1611  ;;  %v2859_v22 = vmul.f32 0.6931472, %v1610_v37  ;;  %v807_v15 = vor.u32 1.1754944e-38, %v806_v60  ;;  %v3268_v60 = vld [vmem:[#allocation32_spill] sm:$0xff]  ;;  %v167_v23 = vpop.xlane.xlu1 %166 }
 0x145   :  { %v784_v30 = vadd.f32 %v3254_v33, %v783_v31  ;;  %vm785_vm1 = vweird.f32 %v3253_v56  ;;  %vm805_vm6 = vcmp.eq.f32.partialorder %v804_v36, 8.507059e+37  ;;  %v792_v1 = vor.u32 1.1754944e-38, %v791_v50  ;;  %v3263_v56 = vld [vmem:[#allocation59_spill] sm:$0xff] }
 0x146   :  { %vm787_vm3 = vmor %vm785_vm1, %vm786_vm9  ;;  %v564_v19 = vsub.f32 %v225_v45, %v3262_v53  ;;  %v474_v20 = vmul.f32 %v2371_v47, %v2272_v63  ;;  %v2870_v12 = vpop.eup %1613  ;;  %v808_v42 = vsel %vm805_vm6, %v807_v15, %v803_v9  ;;  %v461_v61 = vmul.f32 %v2279_v11, %v460_v28 }
 0x147   :  { %v788_v55 = vsel %vm787_vm3, %v3254_v33, %v784_v30  ;;  %vm790_vm7 = vcmp.eq.f32.partialorder %v789_v46, 8.507059e+37  ;;  %v881_v21 = vadd.f32 1e-06, %v865_v5  ;;  %v809_v24 = vmul.f32 %v808_v42, %v565_v40 }
 0x148   :  { %v793_v4 = vsel %vm790_vm7, %v792_v1, %v788_v55  ;;  %v475_v38 = vsub.f32 1.0, %v474_v20  ;;  %v3265_v27 = vsel %vm2377_vm10, %v3263_v56, %v3264_v0  ;;  %v484_v51 = vand.u32 2147483648, %v2272_v63  ;;  %v231_v1 = vpop.xlane.xlu2 %230  ;;  %v3271_v0 = vld [vmem:[#allocation65_spill] sm:$0xff] }
 0x149   :  { %v441_v3 = vsel %vm2822_vm8, %v3266_v39, %v3265_v27  ;;  %v794_v34 = vmul.f32 %v793_v4, %v564_v19  ;;  %v826_v33 = vmul.f32 %v3268_v60, %v3267_v2  ;;  %vm463_vm5 = vweird.f32 %v3252_v48  ;;  %v3272_v27 = vld [vmem:[#allocation25_spill] sm:$0xff] }
 0x14a   :  { %vm464_vm0 = vweird.f32 %v2279_v11  ;;  %v476_v25 = vmul.f32 %v2371_v47, %v475_v38  ;;  %vm479_vm15 = vweird.f32 %v2371_v47  ;;  %v462_v52 = vadd.f32 %v2279_v11, %v461_v61 }
 0x14b   :  { %v852_v37 = vand.u32 2147483647, %v794_v34  ;;  %v482_v29 = vand.u32 2147483647, %v2272_v63  ;;  %v827_v36 = vsub.f32 1.0, %v826_v33  ;;  %v442_v32 = vmul.f32 %v441_v3, %v3262_v53  ;;  %vm2900_vm14 = vmor %vm463_vm5, %vm464_vm0 }
 0x14c   :  { %v467_v28 = vand.u32 2147483647, %v3252_v48  ;;  %v477_v31 = vadd.f32 %v2371_v47, %v476_v25  ;;  %vm478_vm10 = vweird.f32 %v2272_v63  ;;  %1615 = vlog2.f32 %v881_v21 }
 0x14d   :  { %v853_v46 = vand.u32 2147483647, %v809_v24  ;;  %v469_v50 = vand.u32 2147483648, %v3252_v48  ;;  %vm480_vm2 = vmor %vm478_vm10, %vm479_vm15  ;;  %v485_v45 = vor.u32 1.1754944e-38, %v484_v51  ;;  %v828_v9 = vmul.f32 %v3268_v60, %v827_v36 }
 0x14e   :  { %v481_v40 = vsel %vm480_vm2, %v2371_v47, %v477_v31  ;;  %vm831_vm12 = vweird.f32 %v3268_v60  ;;  %v834_v63 = vand.u32 2147483647, %v3267_v2  ;;  %v466_v15 = vsel %vm2900_vm14, %v2279_v11, %v462_v52 }
 0x14f   :  { %v868_v30 = vsub.f32 1.0, %v852_v37  ;;  %vm483_vm8 = vcmp.eq.f32.partialorder %v482_v29, 8.507059e+37  ;;  %v836_v48 = vand.u32 2147483648, %v3267_v2  ;;  %v500_v53 = vadd.f32 1e-06, %v442_v32  ;;  %v229_v29 = vpop.xlane.xlu0 %228 }
 0x150   :  { %v486_v19 = vsel %vm483_vm8, %v485_v45, %v481_v40  ;;  %v829_v20 = vadd.f32 %v3268_v60, %v828_v9  ;;  %vm830_vm11 = vweird.f32 %v3267_v2  ;;  %vm1433_vm4 = vcmask 392512  }
 0x151   :  { %v869_v47 = vsub.f32 1.0, %v853_v46  ;;  %v470_v42 = vor.u32 1.1754944e-38, %v469_v50  ;;  %v487_v61 = vmul.f32 %v486_v19, %v167_v23  ;;  %vm832_vm13 = vmor %vm830_vm11, %vm831_vm12  ;;  %v837_v55 = vor.u32 1.1754944e-38, %v836_v48 }
 0x152   :  { %vm468_vm9 = vcmp.eq.f32.partialorder %v467_v28, 8.507059e+37  ;;  %v833_v11 = vsel %vm832_vm13, %v3268_v60, %v829_v20  ;;  %vm835_vm1 = vcmp.eq.f32.partialorder %v834_v63, 8.507059e+37  ;;  %v567_v21 = vsub.f32 %v231_v1, %v167_v23  ;;  %v1616_v24 = vpop.eup %1615 }
 0x153   :  { %v471_v4 = vsel %vm468_vm9, %v470_v42, %v466_v15  ;;  %v884_v38 = vadd.f32 1e-06, %v868_v30  ;;  %v838_v56 = vsel %vm835_vm1, %v837_v55, %v833_v11  ;;  %v811_v39 = vmul.f32 %v3272_v27, %v3271_v0 }
 0x154   :  { %v501_v3 = vadd.f32 1e-06, %v2851_v41  ;;  %v472_v34 = vmul.f32 %v471_v4, %v2861_v54  ;;  %1617 = vlog2.f32 %v500_v53  ;;  %v839_v51 = vmul.f32 %v838_v56, %v567_v21 }
 0x155   :  { %v885_v2 = vadd.f32 1e-06, %v869_v47  ;;  %v503_v33 = vadd.f32 1e-06, %v487_v61  ;;  %v812_v25 = vsub.f32 1.0, %v811_v39  ;;  %vm1437_vm6 = vcmask 458112  }
 0x156   :  { %v958_v60 = vadd.f32 %v2810_v43, %v926_v57  ;;  %1619 = vlog2.f32 %v2838_v8  ;;  %v855_v52 = vand.u32 2147483647, %v839_v51  ;;  %v821_v37 = vand.u32 2147483648, %v3271_v0 }
 0x157   :  { %v1717_v36 = vmov 0.0   ;;  %1621 = vlog2.f32 %v884_v38  ;;  %v813_v41 = vmul.f32 %v3272_v27, %v812_v25  ;;  %vm816_vm3 = vweird.f32 %v3272_v27 }
 0x158   :  { %82 = vst [vmem:[#allocation7] sm:$0x1] %v1717_v36  ;;  %v819_v28 = vand.u32 2147483647, %v3271_v0  ;;  %v907_v32 = vmul.f32 0.6931472, %v1616_v24  ;;  %1623 = vlog2.f32 %v501_v3  ;;  %vm815_vm5 = vweird.f32 %v3271_v0 }
 0x159   :  { %v502_v62 = vadd.f32 1e-06, %v472_v34  ;;  %v871_v31 = vsub.f32 1.0, %v855_v52  ;;  %vm1441_vm7 = vcmask 523712   ;;  %1625 = vlog2.f32 %v885_v2  ;;  %vm817_vm0 = vmor %vm815_vm5, %vm816_vm3 }
 0x15a   :  { %v814_v43 = vadd.f32 %v3272_v27, %v813_v41  ;;  %v566_v57 = vsub.f32 %v229_v29, %v2861_v54  ;;  %v1618_v8 = vpop.eup %1617  ;;  %v527_v46 = vmul.f32 0.6931472, %v2857_v16  ;;  %1627 = vlog2.f32 %v503_v33 }
 0x15b   :  { %v887_v50 = vadd.f32 1e-06, %v871_v31  ;;  %v822_v45 = vor.u32 1.1754944e-38, %v821_v37  ;;  %v928_v5 = vsub.f32 0.0, %v2814_v13  ;;  %v545_v23 = vsub.f32 0.0, %v2859_v22 }
 0x15c   :  { %v818_v40 = vsel %vm817_vm0, %v3272_v27, %v814_v43  ;;  %vm820_vm15 = vcmp.eq.f32.partialorder %v819_v28, 8.507059e+37  ;;  %v1620_v9 = vpop.eup %1619  ;;  %v1434_v16 = vsel %vm1433_vm4, %v1432_v18, %v2801_v44  ;;  %v909_v54 = vmul.f32 0.6931472, %v2870_v12 }
 0x15d   :  { %1629 = vlog2.f32 %v887_v50  ;;  %v823_v63 = vsel %vm820_vm15, %v822_v45, %v818_v40  ;;  %v1622_v15 = vpop.eup %1621  ;;  %v1436_v30 = vperm.slane %v958_v60, %v2792_v14  ;;  %v929_v13 = vsub.f32 0.0, %v907_v32 }
 0x15e   :  { %1631 = vlog2.f32 %v502_v62  ;;  %v824_v22 = vmul.f32 %v823_v63, %v566_v57  ;;  %v1624_v48 = vpop.eup %1623  ;;  %v1440_v1 = vperm.slane %v2808_v17, %v2677_v59  ;;  %v546_v53 = vsub.f32 0.0, %v2816_v35 }
 0x15f   :  { %v547_v19 = vsub.f32 0.0, %v527_v46  ;;  %v529_v26 = vmul.f32 0.6931472, %v1618_v8  ;;  %v1626_v7 = vpop.eup %1625  ;;  %v960_v18 = vadd.f32 %v2803_v58, %v928_v5  ;;  %v2950_v44 = vadd.s32 4294967208, %v2408_v6 }
 0x160   :  { %v945_v12 = vmul.f32 0.1, %v545_v23  ;;  %v854_v20 = vand.u32 2147483647, %v824_v22  ;;  %v1628_v14 = vpop.eup %1627  ;;  %v930_v47 = vsub.f32 0.0, %v909_v54  ;;  %v1447_v61 = vadd.s32 4294967224, %v2408_v6 }
 0x161   :  { %v911_v42 = vmul.f32 0.6931472, %v1620_v9  ;;  %v913_v55 = vmul.f32 0.6931472, %v1622_v15  ;;  %v1438_v59 = vsel %vm1437_vm6, %v1436_v30, %v1434_v16  ;;  %v531_v35 = vmul.f32 0.6931472, %v1624_v48 }
 0x162   :  { %v961_v17 = vadd.f32 %v945_v12, %v929_v13  ;;  %v870_v11 = vsub.f32 1.0, %v854_v20  ;;  %v946_v24 = vmul.f32 0.1, %v546_v53  ;;  %v947_v4 = vmul.f32 0.1, %v547_v19 }
 0x163   :  { %v1630_v21 = vpop.eup %1629  ;;  %vm1445_vm10 = vcmask 589312   ;;  %v548_v58 = vsub.f32 0.0, %v529_v26  ;;  %v915_v56 = vmul.f32 0.6931472, %v1626_v7  ;;  %v535_v0 = vmul.f32 0.6931472, %v1628_v14 }
 0x164   :  { %v1632_v38 = vpop.eup %1631  ;;  %v886_v27 = vadd.f32 1e-06, %v870_v11  ;;  %v1442_v39 = vsel %vm1441_vm7, %v1440_v1, %v1438_v59  ;;  %v962_v3 = vadd.f32 %v946_v24, %v930_v47  ;;  %v931_v34 = vsub.f32 0.0, %v911_v42  ;;  %v1396_v20 = vld [vmem:[#allocation7] sm:$0x1] }
 0x165   :  { %v932_v51 = vsub.f32 0.0, %v913_v55  ;;  %v1448_v2 = vperm.slane %v961_v17, %v1447_v61  ;;  %v549_v33 = vsub.f32 0.0, %v531_v35  ;;  %v919_v25 = vmul.f32 0.6931472, %v1630_v21 }
 0x166   :  { %1633 = vlog2.f32 %v886_v27  ;;  %v1444_v60 = vperm.slane %v960_v18, %v2769_v49  ;;  %vm1449_vm2 = vcmask 654912   ;;  %v533_v52 = vmul.f32 0.6931472, %v1632_v38 }
 0x167   :  { %v948_v37 = vmul.f32 0.1, %v548_v58  ;;  %vm1453_vm14 = vcmask 720512   ;;  %v933_v29 = vsub.f32 0.0, %v915_v56  ;;  %v551_v36 = vsub.f32 0.0, %v535_v0 }
 0x168   :  { %v3273_v41 = vlaneseq  ;;  %v1452_v32 = vperm.slane %v962_v3, %v2806_v10  ;;  %v1446_v62 = vsel %vm1445_vm10, %v1444_v60, %v1442_v39  ;;  %v1459_v31 = vadd.s32 4294967200, %v2408_v6 }
 0x169   :  { %v964_v43 = vadd.f32 %v948_v37, %v932_v51  ;;  %v963_v57 = vadd.f32 %v947_v4, %v931_v34  ;;  %v1450_v8 = vsel %vm1449_vm2, %v1448_v2, %v1446_v62  ;;  %v949_v46 = vmul.f32 0.1, %v549_v33 }
 0x16a   :  { %v1389_v28 = vshrl.u32 %v3273_v41, 7  ;;  %v935_v50 = vsub.f32 0.0, %v919_v25  ;;  %v550_v49 = vsub.f32 0.0, %v533_v52  ;;  %v1463_v5 = vadd.s32 4294967192, %v2408_v6 }
 0x16b   :  { %v965_v23 = vadd.f32 %v949_v46, %v933_v29  ;;  %v951_v40 = vmul.f32 0.1, %v551_v36  ;;  %v1454_v16 = vsel %vm1453_vm14, %v1452_v32, %v1450_v8  ;;  %vm1457_vm12 = vcmask 786112  }
 0x16c   :  { %v1634_v45 = vpop.eup %1633  ;;  %v1390_v9 = vmul.u32 128, %v1389_v28  ;;  %v1460_v10 = vperm.slane %v964_v43, %v1459_v31  ;;  %v1456_v63 = vperm.slane %v963_v57, %v2950_v44  ;;  %vm1461_vm8 = vcmask 851712  }
 0x16d   :  { %v917_v54 = vmul.f32 0.6931472, %v1634_v45  ;;  %v1471_v15 = vadd.s32 4294967176, %v2408_v6  ;;  %v967_v30 = vadd.f32 %v951_v40, %v935_v50  ;;  %v950_v13 = vmul.f32 0.1, %v550_v49 }
 0x16e   :  { %v1467_v22 = vadd.s32 4294967184, %v2408_v6  ;;  %v1464_v1 = vperm.slane %v965_v23, %v1463_v5  ;;  %v1458_v53 = vsel %vm1457_vm12, %v1456_v63, %v1454_v16  ;;  %v1395_v19 = vadd.s32 %v2408_v6, %v1390_v9 }
 0x16f   :  { %v934_v48 = vsub.f32 0.0, %v917_v54  ;;  %v1462_v26 = vsel %vm1461_vm8, %v1460_v10, %v1458_v53  ;;  %vm1465_vm11 = vcmask 917312   ;;  %v1472_v18 = vperm.slane %v967_v30, %v1471_v15 }
 0x170   :  { %vm1469_vm4 = vcmask 982912   ;;  %vm1473_vm13 = vcmask 1048512   ;;  %vm1397_vm9 = vcmp.lt.s32.totalorder %v1395_v19, 16  ;;  %v1466_v44 = vsel %vm1465_vm11, %v1464_v1, %v1462_v26 }
 0x171   :  { %v966_v7 = vadd.f32 %v950_v13, %v934_v48 }
 0x173   :  { %v1468_v12 = vperm.slane %v966_v7, %v1467_v22 }
 0x175   :  { %v1470_v14 = vsel %vm1469_vm4, %v1468_v12, %v1466_v44 }
 0x176   :  { %v1474_v47 = vsel %vm1473_vm13, %v1472_v18, %v1470_v14 }
 0x177   :  { %v1476_v42 = vsel %vm1397_vm9, %v1474_v47, 0.0 }
 0x178   :  { %v1477_v6 = vadd.f32 %v1476_v42, %v1396_v20 }
 0x17a   :  { %1478 = vst [vmem:[#allocation7] sm:$0x1] %v1477_v6 }
 0x17b   :  { %1489 = dma.vmem_to_hbm [thread:$0]  %s1485_s1, 16, %s1487_s23, [#allocation4]  }
 0x17c   :  { %1711 = dma.done.wait [#allocation4], 16  }
 0x17d   :  { %1712 = vsyncadd [#allocation4], 4294967280 }
 0x17e   :  { %1494 = vsyncpa [#allocation3], 1 }
 0x17f   :  { %1495 = vsyncpa [#allocation6], 1 }
 0x180   :  { %1496 = vsyncpa [#allocation4], 1 }

</bundles_post_ra>
